<compile_context>
chip_gen: v7x
topology: tpu7x:2x2x1
jax: 0.10.0
libtpu: 0.0.40
codegen_flags: <defaults>
</compile_context>

<pallas_src>
import jax
import jax.numpy as jnp
from jax.experimental import pallas as pl
from jax.experimental.pallas import tpu as pltpu


def neural_ode_kernel(ts_ref, z0_ref, w1_ref, b1_ref, wt_ref, w2_ref, b2_ref,
                      out_ref):
    """Euler-integrate the MLP dynamics entirely on-chip.

    ts_ref : VMEM (T, 1)      time grid (column so it can be used vectorized)
    z0_ref : VMEM (Bt, Z)     initial condition (one batch tile)
    w1_ref : VMEM (Z, H)
    b1_ref : VMEM (1, H)
    wt_ref : VMEM (1, H)      time-dependence weights
    w2_ref : VMEM (H, Z)
    b2_ref : VMEM (1, Z)
    out_ref: VMEM (T, Bt, Z)  trajectory, time-major
    """
    T = out_ref.shape[0]
    Z = z0_ref.shape[1]

    # ---- hoist loop-invariant parameter loads (they live in vregs) ----------
    w1 = w1_ref[...]                                   # (Z, H)
    w2 = w2_ref[...]                                   # (H, Z)
    b2 = b2_ref[...]                                   # (1, Z)

    # ---- precompute all time-dependent quantities, vectorized over T -------
    ts = ts_ref[...]                                   # (T, 1)
    dts = ts[1:, :] - ts[:-1, :]                       # (T-1, 1)
    b_eff = b1_ref[...] + ts[:-1, :] * wt_ref[...]     # (T-1, H) = b1 + t_i * wt

    z = z0_ref[...]                                    # (Bt, Z)
    out_ref[0] = z

    # ---- fully-unrolled explicit Euler integration (T is static) -----------
    # NOTE: the chain z_{i+1} <- z_i is strictly serial; everything removable
    # from the per-step critical path has been hoisted above.  Trajectory
    # stores are not on the z->z dependency, so the scheduler overlaps them
    # with the next step's compute.
    for i in range(T - 1):
        # Layer 1 (K = Z = 8) on the VPU as Z broadcast-FMAs: at this shape the
        # MXU would be pure push/pop latency with <2% row utilization.
        h_pre = b_eff[i:i + 1, :]                      # (1, H), broadcasts over batch
        for k in range(Z):
            h_pre = h_pre + z[:, k:k + 1] * w1[k:k + 1, :]   # (Bt,1)*(1,H) -> (Bt,H)
        h = jnp.tanh(h_pre)                            # EUP slot (otherwise idle)

        # Layer 2 (K = H = 32) stays on the MXU.
        dz = jnp.dot(h, w2, preferred_element_type=jnp.float32) + b2   # (Bt, Z)

        z = z + dts[i:i + 1, :] * dz                   # Euler update
        out_ref[i + 1] = z
    # TODO(synk): for large T, time-chunk the output BlockSpec ("arbitrary" axis
    # + VMEM carry of z) so the full trajectory is never resident in VMEM (v7x
    # has only 64 MiB per TC); unnecessary at T=8.


def neural_ode_forward(z0, ts, params, *, batch_tile=None):
    """Wrapper: returns z_traj with PyTorch shape (batch, z_dim, n_timesteps)."""
    w1, b1, wt, w2, b2 = params
    B, Z = z0.shape
    H = w1.shape[1]
    T = ts.shape[0]

    # Batch-tile grid: exact split of independent rows; marked "parallel" so it
    # shards across both TensorCores on v7x.  At B=2 this is grid=(1,) and the
    # block covers the full batch (so the (8,128) tiling rule is satisfied).
    if batch_tile is None:
        batch_tile = B if B <= 8 else 8
    assert B % batch_tile == 0, "batch must be divisible by batch_tile"
    grid = (B // batch_tile,)

    ts_col = ts.astype(jnp.float32).reshape(T, 1)

    traj_tbz = pl.pallas_call(
        neural_ode_kernel,
        out_shape=jax.ShapeDtypeStruct((T, B, Z), jnp.float32),
        grid=grid,
        in_specs=[
            pl.BlockSpec((T, 1), lambda i: (0, 0)),               # ts
            pl.BlockSpec((batch_tile, Z), lambda i: (i, 0)),      # z0
            pl.BlockSpec((Z, H), lambda i: (0, 0)),               # w1
            pl.BlockSpec((1, H), lambda i: (0, 0)),               # b1
            pl.BlockSpec((1, H), lambda i: (0, 0)),               # wt
            pl.BlockSpec((H, Z), lambda i: (0, 0)),               # w2
            pl.BlockSpec((1, Z), lambda i: (0, 0)),               # b2
        ],
        out_specs=pl.BlockSpec((T, batch_tile, Z), lambda i: (0, i, 0)),
        compiler_params=pltpu.CompilerParams(
            dimension_semantics=("parallel",),
        ),
    )(ts_col, z0, w1, b1, wt, w2, b2)

    # (T, B, Z) -> (B, Z, T) to match the PyTorch return convention.
    # (Negligible at this size; keep (T,B,Z) downstream if T/B ever grow.)
    return jnp.transpose(traj_tbz, (1, 2, 0))


def _reference_forward(z0, ts, params):
    """Pure-JAX Euler reference for a sanity check."""
    w1, b1, wt, w2, b2 = params

    def f(z, t):
        h = jnp.tanh(z @ w1 + b1 + t * wt)
        return h @ w2 + b2

    zs = [z0]
    z = z0
    for i in range(ts.shape[0] - 1):
        dt = ts[i + 1] - ts[i]
        z = z + dt * f(z, ts[i])
        zs.append(z)
    return jnp.stack(zs, axis=-1)  # (B, Z, T)


if __name__ == "__main__":
    B, Z, H, T = 2, 8, 32, 8  # batch, z_dim, hidden, n_timesteps

    key = jax.random.PRNGKey(0)
    k_z0, k_w1, k_b1, k_wt, k_w2, k_b2 = jax.random.split(key, 6)

    z0 = jax.random.normal(k_z0, (B, Z), dtype=jnp.float32)
    ts = jnp.linspace(0.0, 1.0, T, dtype=jnp.float32)

    w1 = 0.1 * jax.random.normal(k_w1, (Z, H), dtype=jnp.float32)
    b1 = 0.1 * jax.random.normal(k_b1, (1, H), dtype=jnp.float32)
    wt = 0.1 * jax.random.normal(k_wt, (1, H), dtype=jnp.float32)
    w2 = 0.1 * jax.random.normal(k_w2, (H, Z), dtype=jnp.float32)
    b2 = 0.1 * jax.random.normal(k_b2, (1, Z), dtype=jnp.float32)
    params = (w1, b1, wt, w2, b2)

    z_traj = neural_ode_forward(z0, ts, params)
    jax.block_until_ready(z_traj)

    assert z_traj.shape == (B, Z, T), z_traj.shape

    ref = _reference_forward(z0, ts, params)
    assert jnp.allclose(z_traj, ref, atol=1e-5, rtol=1e-5), "mismatch vs reference"

    # TODO(synk): the adjoint-based backward (OdeintAdjointDiff.backward) is not
    # part of the forward pass and is not implemented here.
    print("KERNEL_OK")
</pallas_src>

<mosaic_0001>
module attributes {stable_mosaic.version = 11 : i64} {
  func.func @neural_ode_kernel(%arg0: i32, %arg1: memref<8x1xf32, #tpu.memory_space<vmem>>, %arg2: memref<2x8xf32, #tpu.memory_space<vmem>>, %arg3: memref<8x32xf32, #tpu.memory_space<vmem>>, %arg4: memref<1x32xf32, #tpu.memory_space<vmem>>, %arg5: memref<1x32xf32, #tpu.memory_space<vmem>>, %arg6: memref<32x8xf32, #tpu.memory_space<vmem>>, %arg7: memref<1x8xf32, #tpu.memory_space<vmem>>, %arg8: memref<8x2x8xf32, #tpu.memory_space<vmem>>) attributes {dimension_semantics = [#tpu.dimension_semantics<parallel>], iteration_bounds = array<i64: 1>, scalar_prefetch = 0 : i64, scratch_operands = 0 : i64, tpu.core_type = #tpu.core_type<tc>, window_params = [{pipeline_mode = #tpu.pipeline_mode<synchronous>, transform_indices = @transform_0, window_bounds = array<i64: 8, 1>}, {transform_indices = @transform_1, window_bounds = array<i64: 2, 8>}, {pipeline_mode = #tpu.pipeline_mode<synchronous>, transform_indices = @transform_2, window_bounds = array<i64: 8, 32>}, {pipeline_mode = #tpu.pipeline_mode<synchronous>, transform_indices = @transform_3, window_bounds = array<i64: 1, 32>}, {pipeline_mode = #tpu.pipeline_mode<synchronous>, transform_indices = @transform_4, window_bounds = array<i64: 1, 32>}, {pipeline_mode = #tpu.pipeline_mode<synchronous>, transform_indices = @transform_5, window_bounds = array<i64: 32, 8>}, {pipeline_mode = #tpu.pipeline_mode<synchronous>, transform_indices = @transform_6, window_bounds = array<i64: 1, 8>}, {transform_indices = @transform_7, window_bounds = array<i64: 8, 2, 8>}]} {
    %c0 = arith.constant 0 : index
    %c0_0 = arith.constant 0 : index
    %0 = vector.load %arg3[%c0, %c0_0] : memref<8x32xf32, #tpu.memory_space<vmem>>, vector<8x32xf32>
    %c0_1 = arith.constant 0 : index
    %c0_2 = arith.constant 0 : index
    %1 = vector.load %arg6[%c0_1, %c0_2] : memref<32x8xf32, #tpu.memory_space<vmem>>, vector<32x8xf32>
    %c0_3 = arith.constant 0 : index
    %c0_4 = arith.constant 0 : index
    %2 = vector.load %arg7[%c0_3, %c0_4] : memref<1x8xf32, #tpu.memory_space<vmem>>, vector<1x8xf32>
    %c0_5 = arith.constant 0 : index
    %c0_6 = arith.constant 0 : index
    %3 = vector.load %arg1[%c0_5, %c0_6] : memref<8x1xf32, #tpu.memory_space<vmem>>, vector<8x1xf32>
    %4 = vector.extract_strided_slice %3 {offsets = [1, 0], sizes = [7, 1], strides = [1, 1]} : vector<8x1xf32> to vector<7x1xf32>
    %5 = vector.extract_strided_slice %3 {offsets = [0, 0], sizes = [7, 1], strides = [1, 1]} : vector<8x1xf32> to vector<7x1xf32>
    %6 = arith.subf %4, %5 : vector<7x1xf32>
    %c0_7 = arith.constant 0 : index
    %c0_8 = arith.constant 0 : index
    %7 = vector.load %arg4[%c0_7, %c0_8] : memref<1x32xf32, #tpu.memory_space<vmem>>, vector<1x32xf32>
    %8 = vector.extract_strided_slice %3 {offsets = [0, 0], sizes = [7, 1], strides = [1, 1]} : vector<8x1xf32> to vector<7x1xf32>
    %c0_9 = arith.constant 0 : index
    %c0_10 = arith.constant 0 : index
    %9 = vector.load %arg5[%c0_9, %c0_10] : memref<1x32xf32, #tpu.memory_space<vmem>>, vector<1x32xf32>
    %10 = vector.broadcast %8 : vector<7x1xf32> to vector<7x32xf32>
    %11 = vector.broadcast %9 : vector<1x32xf32> to vector<7x32xf32>
    %12 = arith.mulf %10, %11 : vector<7x32xf32>
    %13 = vector.broadcast %7 : vector<1x32xf32> to vector<7x32xf32>
    %14 = arith.addf %13, %12 : vector<7x32xf32>
    %c0_11 = arith.constant 0 : index
    %c0_12 = arith.constant 0 : index
    %15 = vector.load %arg2[%c0_11, %c0_12] : memref<2x8xf32, #tpu.memory_space<vmem>>, vector<2x8xf32>
    %c0_13 = arith.constant 0 : index
    %c0_14 = arith.constant 0 : index
    %c0_15 = arith.constant 0 : index
    %16 = vector.load %arg8[%c0_13, %c0_14, %c0_15] : memref<8x2x8xf32, #tpu.memory_space<vmem>>, vector<1x2x8xf32>
    %17 = vector.shape_cast %16 : vector<1x2x8xf32> to vector<2x8xf32>
    %18 = vector.shape_cast %15 : vector<2x8xf32> to vector<1x2x8xf32>
    tpu.vector_store %arg8[%c0_13, %c0_14, %c0_15], %18 {strides = array<i32>} : memref<8x2x8xf32, #tpu.memory_space<vmem>>, vector<1x2x8xf32>,
    %19 = vector.extract_strided_slice %14 {offsets = [0, 0], sizes = [1, 32], strides = [1, 1]} : vector<7x32xf32> to vector<1x32xf32>
    %20 = vector.extract_strided_slice %15 {offsets = [0, 0], sizes = [2, 1], strides = [1, 1]} : vector<2x8xf32> to vector<2x1xf32>
    %21 = vector.extract_strided_slice %0 {offsets = [0, 0], sizes = [1, 32], strides = [1, 1]} : vector<8x32xf32> to vector<1x32xf32>
    %22 = vector.broadcast %20 : vector<2x1xf32> to vector<2x32xf32>
    %23 = vector.broadcast %21 : vector<1x32xf32> to vector<2x32xf32>
    %24 = arith.mulf %22, %23 : vector<2x32xf32>
    %25 = vector.broadcast %19 : vector<1x32xf32> to vector<2x32xf32>
    %26 = arith.addf %25, %24 : vector<2x32xf32>
    %27 = vector.extract_strided_slice %15 {offsets = [0, 1], sizes = [2, 1], strides = [1, 1]} : vector<2x8xf32> to vector<2x1xf32>
    %28 = vector.extract_strided_slice %0 {offsets = [1, 0], sizes = [1, 32], strides = [1, 1]} : vector<8x32xf32> to vector<1x32xf32>
    %29 = vector.broadcast %27 : vector<2x1xf32> to vector<2x32xf32>
    %30 = vector.broadcast %28 : vector<1x32xf32> to vector<2x32xf32>
    %31 = arith.mulf %29, %30 : vector<2x32xf32>
    %32 = arith.addf %26, %31 : vector<2x32xf32>
    %33 = vector.extract_strided_slice %15 {offsets = [0, 2], sizes = [2, 1], strides = [1, 1]} : vector<2x8xf32> to vector<2x1xf32>
    %34 = vector.extract_strided_slice %0 {offsets = [2, 0], sizes = [1, 32], strides = [1, 1]} : vector<8x32xf32> to vector<1x32xf32>
    %35 = vector.broadcast %33 : vector<2x1xf32> to vector<2x32xf32>
    %36 = vector.broadcast %34 : vector<1x32xf32> to vector<2x32xf32>
    %37 = arith.mulf %35, %36 : vector<2x32xf32>
    %38 = arith.addf %32, %37 : vector<2x32xf32>
    %39 = vector.extract_strided_slice %15 {offsets = [0, 3], sizes = [2, 1], strides = [1, 1]} : vector<2x8xf32> to vector<2x1xf32>
    %40 = vector.extract_strided_slice %0 {offsets = [3, 0], sizes = [1, 32], strides = [1, 1]} : vector<8x32xf32> to vector<1x32xf32>
    %41 = vector.broadcast %39 : vector<2x1xf32> to vector<2x32xf32>
    %42 = vector.broadcast %40 : vector<1x32xf32> to vector<2x32xf32>
    %43 = arith.mulf %41, %42 : vector<2x32xf32>
    %44 = arith.addf %38, %43 : vector<2x32xf32>
    %45 = vector.extract_strided_slice %15 {offsets = [0, 4], sizes = [2, 1], strides = [1, 1]} : vector<2x8xf32> to vector<2x1xf32>
    %46 = vector.extract_strided_slice %0 {offsets = [4, 0], sizes = [1, 32], strides = [1, 1]} : vector<8x32xf32> to vector<1x32xf32>
    %47 = vector.broadcast %45 : vector<2x1xf32> to vector<2x32xf32>
    %48 = vector.broadcast %46 : vector<1x32xf32> to vector<2x32xf32>
    %49 = arith.mulf %47, %48 : vector<2x32xf32>
    %50 = arith.addf %44, %49 : vector<2x32xf32>
    %51 = vector.extract_strided_slice %15 {offsets = [0, 5], sizes = [2, 1], strides = [1, 1]} : vector<2x8xf32> to vector<2x1xf32>
    %52 = vector.extract_strided_slice %0 {offsets = [5, 0], sizes = [1, 32], strides = [1, 1]} : vector<8x32xf32> to vector<1x32xf32>
    %53 = vector.broadcast %51 : vector<2x1xf32> to vector<2x32xf32>
    %54 = vector.broadcast %52 : vector<1x32xf32> to vector<2x32xf32>
    %55 = arith.mulf %53, %54 : vector<2x32xf32>
    %56 = arith.addf %50, %55 : vector<2x32xf32>
    %57 = vector.extract_strided_slice %15 {offsets = [0, 6], sizes = [2, 1], strides = [1, 1]} : vector<2x8xf32> to vector<2x1xf32>
    %58 = vector.extract_strided_slice %0 {offsets = [6, 0], sizes = [1, 32], strides = [1, 1]} : vector<8x32xf32> to vector<1x32xf32>
    %59 = vector.broadcast %57 : vector<2x1xf32> to vector<2x32xf32>
    %60 = vector.broadcast %58 : vector<1x32xf32> to vector<2x32xf32>
    %61 = arith.mulf %59, %60 : vector<2x32xf32>
    %62 = arith.addf %56, %61 : vector<2x32xf32>
    %63 = vector.extract_strided_slice %15 {offsets = [0, 7], sizes = [2, 1], strides = [1, 1]} : vector<2x8xf32> to vector<2x1xf32>
    %64 = vector.extract_strided_slice %0 {offsets = [7, 0], sizes = [1, 32], strides = [1, 1]} : vector<8x32xf32> to vector<1x32xf32>
    %65 = vector.broadcast %63 : vector<2x1xf32> to vector<2x32xf32>
    %66 = vector.broadcast %64 : vector<1x32xf32> to vector<2x32xf32>
    %67 = arith.mulf %65, %66 : vector<2x32xf32>
    %68 = arith.addf %62, %67 : vector<2x32xf32>
    %69 = math.tanh %68 : vector<2x32xf32>
    %cst = arith.constant dense<0.000000e+00> : vector<2x8xf32>
    %70 = tpu.matmul %69, %1, %cst {dimension_numbers = #tpu.dot_dimension_numbers<[1], [0], [0], [1], [0, 0, 1, 1], [], []>} : vector<2x32xf32>, vector<32x8xf32>, vector<2x8xf32> -> vector<2x8xf32>
    %71 = vector.broadcast %2 : vector<1x8xf32> to vector<2x8xf32>
    %72 = arith.addf %70, %71 : vector<2x8xf32>
    %73 = vector.extract_strided_slice %6 {offsets = [0, 0], sizes = [1, 1], strides = [1, 1]} : vector<7x1xf32> to vector<1x1xf32>
    %74 = vector.broadcast %73 : vector<1x1xf32> to vector<2x8xf32>
    %75 = arith.mulf %74, %72 : vector<2x8xf32>
    %76 = arith.addf %15, %75 : vector<2x8xf32>
    %c1 = arith.constant 1 : index
    %c0_16 = arith.constant 0 : index
    %c0_17 = arith.constant 0 : index
    %77 = vector.load %arg8[%c1, %c0_16, %c0_17] : memref<8x2x8xf32, #tpu.memory_space<vmem>>, vector<1x2x8xf32>
    %78 = vector.shape_cast %77 : vector<1x2x8xf32> to vector<2x8xf32>
    %79 = vector.shape_cast %76 : vector<2x8xf32> to vector<1x2x8xf32>
    tpu.vector_store %arg8[%c1, %c0_16, %c0_17], %79 {strides = array<i32>} : memref<8x2x8xf32, #tpu.memory_space<vmem>>, vector<1x2x8xf32>,
    %80 = vector.extract_strided_slice %14 {offsets = [1, 0], sizes = [1, 32], strides = [1, 1]} : vector<7x32xf32> to vector<1x32xf32>
    %81 = vector.extract_strided_slice %76 {offsets = [0, 0], sizes = [2, 1], strides = [1, 1]} : vector<2x8xf32> to vector<2x1xf32>
    %82 = vector.extract_strided_slice %0 {offsets = [0, 0], sizes = [1, 32], strides = [1, 1]} : vector<8x32xf32> to vector<1x32xf32>
    %83 = vector.broadcast %81 : vector<2x1xf32> to vector<2x32xf32>
    %84 = vector.broadcast %82 : vector<1x32xf32> to vector<2x32xf32>
    %85 = arith.mulf %83, %84 : vector<2x32xf32>
    %86 = vector.broadcast %80 : vector<1x32xf32> to vector<2x32xf32>
    %87 = arith.addf %86, %85 : vector<2x32xf32>
    %88 = vector.extract_strided_slice %76 {offsets = [0, 1], sizes = [2, 1], strides = [1, 1]} : vector<2x8xf32> to vector<2x1xf32>
    %89 = vector.extract_strided_slice %0 {offsets = [1, 0], sizes = [1, 32], strides = [1, 1]} : vector<8x32xf32> to vector<1x32xf32>
    %90 = vector.broadcast %88 : vector<2x1xf32> to vector<2x32xf32>
    %91 = vector.broadcast %89 : vector<1x32xf32> to vector<2x32xf32>
    %92 = arith.mulf %90, %91 : vector<2x32xf32>
    %93 = arith.addf %87, %92 : vector<2x32xf32>
    %94 = vector.extract_strided_slice %76 {offsets = [0, 2], sizes = [2, 1], strides = [1, 1]} : vector<2x8xf32> to vector<2x1xf32>
    %95 = vector.extract_strided_slice %0 {offsets = [2, 0], sizes = [1, 32], strides = [1, 1]} : vector<8x32xf32> to vector<1x32xf32>
    %96 = vector.broadcast %94 : vector<2x1xf32> to vector<2x32xf32>
    %97 = vector.broadcast %95 : vector<1x32xf32> to vector<2x32xf32>
    %98 = arith.mulf %96, %97 : vector<2x32xf32>
    %99 = arith.addf %93, %98 : vector<2x32xf32>
    %100 = vector.extract_strided_slice %76 {offsets = [0, 3], sizes = [2, 1], strides = [1, 1]} : vector<2x8xf32> to vector<2x1xf32>
    %101 = vector.extract_strided_slice %0 {offsets = [3, 0], sizes = [1, 32], strides = [1, 1]} : vector<8x32xf32> to vector<1x32xf32>
    %102 = vector.broadcast %100 : vector<2x1xf32> to vector<2x32xf32>
    %103 = vector.broadcast %101 : vector<1x32xf32> to vector<2x32xf32>
    %104 = arith.mulf %102, %103 : vector<2x32xf32>
    %105 = arith.addf %99, %104 : vector<2x32xf32>
    %106 = vector.extract_strided_slice %76 {offsets = [0, 4], sizes = [2, 1], strides = [1, 1]} : vector<2x8xf32> to vector<2x1xf32>
    %107 = vector.extract_strided_slice %0 {offsets = [4, 0], sizes = [1, 32], strides = [1, 1]} : vector<8x32xf32> to vector<1x32xf32>
    %108 = vector.broadcast %106 : vector<2x1xf32> to vector<2x32xf32>
    %109 = vector.broadcast %107 : vector<1x32xf32> to vector<2x32xf32>
    %110 = arith.mulf %108, %109 : vector<2x32xf32>
    %111 = arith.addf %105, %110 : vector<2x32xf32>
    %112 = vector.extract_strided_slice %76 {offsets = [0, 5], sizes = [2, 1], strides = [1, 1]} : vector<2x8xf32> to vector<2x1xf32>
    %113 = vector.extract_strided_slice %0 {offsets = [5, 0], sizes = [1, 32], strides = [1, 1]} : vector<8x32xf32> to vector<1x32xf32>
    %114 = vector.broadcast %112 : vector<2x1xf32> to vector<2x32xf32>
    %115 = vector.broadcast %113 : vector<1x32xf32> to vector<2x32xf32>
    %116 = arith.mulf %114, %115 : vector<2x32xf32>
    %117 = arith.addf %111, %116 : vector<2x32xf32>
    %118 = vector.extract_strided_slice %76 {offsets = [0, 6], sizes = [2, 1], strides = [1, 1]} : vector<2x8xf32> to vector<2x1xf32>
    %119 = vector.extract_strided_slice %0 {offsets = [6, 0], sizes = [1, 32], strides = [1, 1]} : vector<8x32xf32> to vector<1x32xf32>
    %120 = vector.broadcast %118 : vector<2x1xf32> to vector<2x32xf32>
    %121 = vector.broadcast %119 : vector<1x32xf32> to vector<2x32xf32>
    %122 = arith.mulf %120, %121 : vector<2x32xf32>
    %123 = arith.addf %117, %122 : vector<2x32xf32>
    %124 = vector.extract_strided_slice %76 {offsets = [0, 7], sizes = [2, 1], strides = [1, 1]} : vector<2x8xf32> to vector<2x1xf32>
    %125 = vector.extract_strided_slice %0 {offsets = [7, 0], sizes = [1, 32], strides = [1, 1]} : vector<8x32xf32> to vector<1x32xf32>
    %126 = vector.broadcast %124 : vector<2x1xf32> to vector<2x32xf32>
    %127 = vector.broadcast %125 : vector<1x32xf32> to vector<2x32xf32>
    %128 = arith.mulf %126, %127 : vector<2x32xf32>
    %129 = arith.addf %123, %128 : vector<2x32xf32>
    %130 = math.tanh %129 : vector<2x32xf32>
    %cst_18 = arith.constant dense<0.000000e+00> : vector<2x8xf32>
    %131 = tpu.matmul %130, %1, %cst_18 {dimension_numbers = #tpu.dot_dimension_numbers<[1], [0], [0], [1], [0, 0, 1, 1], [], []>} : vector<2x32xf32>, vector<32x8xf32>, vector<2x8xf32> -> vector<2x8xf32>
    %132 = vector.broadcast %2 : vector<1x8xf32> to vector<2x8xf32>
    %133 = arith.addf %131, %132 : vector<2x8xf32>
    %134 = vector.extract_strided_slice %6 {offsets = [1, 0], sizes = [1, 1], strides = [1, 1]} : vector<7x1xf32> to vector<1x1xf32>
    %135 = vector.broadcast %134 : vector<1x1xf32> to vector<2x8xf32>
    %136 = arith.mulf %135, %133 : vector<2x8xf32>
    %137 = arith.addf %76, %136 : vector<2x8xf32>
    %c2 = arith.constant 2 : index
    %c0_19 = arith.constant 0 : index
    %c0_20 = arith.constant 0 : index
    %138 = vector.load %arg8[%c2, %c0_19, %c0_20] : memref<8x2x8xf32, #tpu.memory_space<vmem>>, vector<1x2x8xf32>
    %139 = vector.shape_cast %138 : vector<1x2x8xf32> to vector<2x8xf32>
    %140 = vector.shape_cast %137 : vector<2x8xf32> to vector<1x2x8xf32>
    tpu.vector_store %arg8[%c2, %c0_19, %c0_20], %140 {strides = array<i32>} : memref<8x2x8xf32, #tpu.memory_space<vmem>>, vector<1x2x8xf32>,
    %141 = vector.extract_strided_slice %14 {offsets = [2, 0], sizes = [1, 32], strides = [1, 1]} : vector<7x32xf32> to vector<1x32xf32>
    %142 = vector.extract_strided_slice %137 {offsets = [0, 0], sizes = [2, 1], strides = [1, 1]} : vector<2x8xf32> to vector<2x1xf32>
    %143 = vector.extract_strided_slice %0 {offsets = [0, 0], sizes = [1, 32], strides = [1, 1]} : vector<8x32xf32> to vector<1x32xf32>
    %144 = vector.broadcast %142 : vector<2x1xf32> to vector<2x32xf32>
    %145 = vector.broadcast %143 : vector<1x32xf32> to vector<2x32xf32>
    %146 = arith.mulf %144, %145 : vector<2x32xf32>
    %147 = vector.broadcast %141 : vector<1x32xf32> to vector<2x32xf32>
    %148 = arith.addf %147, %146 : vector<2x32xf32>
    %149 = vector.extract_strided_slice %137 {offsets = [0, 1], sizes = [2, 1], strides = [1, 1]} : vector<2x8xf32> to vector<2x1xf32>
    %150 = vector.extract_strided_slice %0 {offsets = [1, 0], sizes = [1, 32], strides = [1, 1]} : vector<8x32xf32> to vector<1x32xf32>
    %151 = vector.broadcast %149 : vector<2x1xf32> to vector<2x32xf32>
    %152 = vector.broadcast %150 : vector<1x32xf32> to vector<2x32xf32>
    %153 = arith.mulf %151, %152 : vector<2x32xf32>
    %154 = arith.addf %148, %153 : vector<2x32xf32>
    %155 = vector.extract_strided_slice %137 {offsets = [0, 2], sizes = [2, 1], strides = [1, 1]} : vector<2x8xf32> to vector<2x1xf32>
    %156 = vector.extract_strided_slice %0 {offsets = [2, 0], sizes = [1, 32], strides = [1, 1]} : vector<8x32xf32> to vector<1x32xf32>
    %157 = vector.broadcast %155 : vector<2x1xf32> to vector<2x32xf32>
    %158 = vector.broadcast %156 : vector<1x32xf32> to vector<2x32xf32>
    %159 = arith.mulf %157, %158 : vector<2x32xf32>
    %160 = arith.addf %154, %159 : vector<2x32xf32>
    %161 = vector.extract_strided_slice %137 {offsets = [0, 3], sizes = [2, 1], strides = [1, 1]} : vector<2x8xf32> to vector<2x1xf32>
    %162 = vector.extract_strided_slice %0 {offsets = [3, 0], sizes = [1, 32], strides = [1, 1]} : vector<8x32xf32> to vector<1x32xf32>
    %163 = vector.broadcast %161 : vector<2x1xf32> to vector<2x32xf32>
    %164 = vector.broadcast %162 : vector<1x32xf32> to vector<2x32xf32>
    %165 = arith.mulf %163, %164 : vector<2x32xf32>
    %166 = arith.addf %160, %165 : vector<2x32xf32>
    %167 = vector.extract_strided_slice %137 {offsets = [0, 4], sizes = [2, 1], strides = [1, 1]} : vector<2x8xf32> to vector<2x1xf32>
    %168 = vector.extract_strided_slice %0 {offsets = [4, 0], sizes = [1, 32], strides = [1, 1]} : vector<8x32xf32> to vector<1x32xf32>
    %169 = vector.broadcast %167 : vector<2x1xf32> to vector<2x32xf32>
    %170 = vector.broadcast %168 : vector<1x32xf32> to vector<2x32xf32>
    %171 = arith.mulf %169, %170 : vector<2x32xf32>
    %172 = arith.addf %166, %171 : vector<2x32xf32>
    %173 = vector.extract_strided_slice %137 {offsets = [0, 5], sizes = [2, 1], strides = [1, 1]} : vector<2x8xf32> to vector<2x1xf32>
    %174 = vector.extract_strided_slice %0 {offsets = [5, 0], sizes = [1, 32], strides = [1, 1]} : vector<8x32xf32> to vector<1x32xf32>
    %175 = vector.broadcast %173 : vector<2x1xf32> to vector<2x32xf32>
    %176 = vector.broadcast %174 : vector<1x32xf32> to vector<2x32xf32>
    %177 = arith.mulf %175, %176 : vector<2x32xf32>
    %178 = arith.addf %172, %177 : vector<2x32xf32>
    %179 = vector.extract_strided_slice %137 {offsets = [0, 6], sizes = [2, 1], strides = [1, 1]} : vector<2x8xf32> to vector<2x1xf32>
    %180 = vector.extract_strided_slice %0 {offsets = [6, 0], sizes = [1, 32], strides = [1, 1]} : vector<8x32xf32> to vector<1x32xf32>
    %181 = vector.broadcast %179 : vector<2x1xf32> to vector<2x32xf32>
    %182 = vector.broadcast %180 : vector<1x32xf32> to vector<2x32xf32>
    %183 = arith.mulf %181, %182 : vector<2x32xf32>
    %184 = arith.addf %178, %183 : vector<2x32xf32>
    %185 = vector.extract_strided_slice %137 {offsets = [0, 7], sizes = [2, 1], strides = [1, 1]} : vector<2x8xf32> to vector<2x1xf32>
    %186 = vector.extract_strided_slice %0 {offsets = [7, 0], sizes = [1, 32], strides = [1, 1]} : vector<8x32xf32> to vector<1x32xf32>
    %187 = vector.broadcast %185 : vector<2x1xf32> to vector<2x32xf32>
    %188 = vector.broadcast %186 : vector<1x32xf32> to vector<2x32xf32>
    %189 = arith.mulf %187, %188 : vector<2x32xf32>
    %190 = arith.addf %184, %189 : vector<2x32xf32>
    %191 = math.tanh %190 : vector<2x32xf32>
    %cst_21 = arith.constant dense<0.000000e+00> : vector<2x8xf32>
    %192 = tpu.matmul %191, %1, %cst_21 {dimension_numbers = #tpu.dot_dimension_numbers<[1], [0], [0], [1], [0, 0, 1, 1], [], []>} : vector<2x32xf32>, vector<32x8xf32>, vector<2x8xf32> -> vector<2x8xf32>
    %193 = vector.broadcast %2 : vector<1x8xf32> to vector<2x8xf32>
    %194 = arith.addf %192, %193 : vector<2x8xf32>
    %195 = vector.extract_strided_slice %6 {offsets = [2, 0], sizes = [1, 1], strides = [1, 1]} : vector<7x1xf32> to vector<1x1xf32>
    %196 = vector.broadcast %195 : vector<1x1xf32> to vector<2x8xf32>
    %197 = arith.mulf %196, %194 : vector<2x8xf32>
    %198 = arith.addf %137, %197 : vector<2x8xf32>
    %c3 = arith.constant 3 : index
    %c0_22 = arith.constant 0 : index
    %c0_23 = arith.constant 0 : index
    %199 = vector.load %arg8[%c3, %c0_22, %c0_23] : memref<8x2x8xf32, #tpu.memory_space<vmem>>, vector<1x2x8xf32>
    %200 = vector.shape_cast %199 : vector<1x2x8xf32> to vector<2x8xf32>
    %201 = vector.shape_cast %198 : vector<2x8xf32> to vector<1x2x8xf32>
    tpu.vector_store %arg8[%c3, %c0_22, %c0_23], %201 {strides = array<i32>} : memref<8x2x8xf32, #tpu.memory_space<vmem>>, vector<1x2x8xf32>,
    %202 = vector.extract_strided_slice %14 {offsets = [3, 0], sizes = [1, 32], strides = [1, 1]} : vector<7x32xf32> to vector<1x32xf32>
    %203 = vector.extract_strided_slice %198 {offsets = [0, 0], sizes = [2, 1], strides = [1, 1]} : vector<2x8xf32> to vector<2x1xf32>
    %204 = vector.extract_strided_slice %0 {offsets = [0, 0], sizes = [1, 32], strides = [1, 1]} : vector<8x32xf32> to vector<1x32xf32>
    %205 = vector.broadcast %203 : vector<2x1xf32> to vector<2x32xf32>
    %206 = vector.broadcast %204 : vector<1x32xf32> to vector<2x32xf32>
    %207 = arith.mulf %205, %206 : vector<2x32xf32>
    %208 = vector.broadcast %202 : vector<1x32xf32> to vector<2x32xf32>
    %209 = arith.addf %208, %207 : vector<2x32xf32>
    %210 = vector.extract_strided_slice %198 {offsets = [0, 1], sizes = [2, 1], strides = [1, 1]} : vector<2x8xf32> to vector<2x1xf32>
    %211 = vector.extract_strided_slice %0 {offsets = [1, 0], sizes = [1, 32], strides = [1, 1]} : vector<8x32xf32> to vector<1x32xf32>
    %212 = vector.broadcast %210 : vector<2x1xf32> to vector<2x32xf32>
    %213 = vector.broadcast %211 : vector<1x32xf32> to vector<2x32xf32>
    %214 = arith.mulf %212, %213 : vector<2x32xf32>
    %215 = arith.addf %209, %214 : vector<2x32xf32>
    %216 = vector.extract_strided_slice %198 {offsets = [0, 2], sizes = [2, 1], strides = [1, 1]} : vector<2x8xf32> to vector<2x1xf32>
    %217 = vector.extract_strided_slice %0 {offsets = [2, 0], sizes = [1, 32], strides = [1, 1]} : vector<8x32xf32> to vector<1x32xf32>
    %218 = vector.broadcast %216 : vector<2x1xf32> to vector<2x32xf32>
    %219 = vector.broadcast %217 : vector<1x32xf32> to vector<2x32xf32>
    %220 = arith.mulf %218, %219 : vector<2x32xf32>
    %221 = arith.addf %215, %220 : vector<2x32xf32>
    %222 = vector.extract_strided_slice %198 {offsets = [0, 3], sizes = [2, 1], strides = [1, 1]} : vector<2x8xf32> to vector<2x1xf32>
    %223 = vector.extract_strided_slice %0 {offsets = [3, 0], sizes = [1, 32], strides = [1, 1]} : vector<8x32xf32> to vector<1x32xf32>
    %224 = vector.broadcast %222 : vector<2x1xf32> to vector<2x32xf32>
    %225 = vector.broadcast %223 : vector<1x32xf32> to vector<2x32xf32>
    %226 = arith.mulf %224, %225 : vector<2x32xf32>
    %227 = arith.addf %221, %226 : vector<2x32xf32>
    %228 = vector.extract_strided_slice %198 {offsets = [0, 4], sizes = [2, 1], strides = [1, 1]} : vector<2x8xf32> to vector<2x1xf32>
    %229 = vector.extract_strided_slice %0 {offsets = [4, 0], sizes = [1, 32], strides = [1, 1]} : vector<8x32xf32> to vector<1x32xf32>
    %230 = vector.broadcast %228 : vector<2x1xf32> to vector<2x32xf32>
    %231 = vector.broadcast %229 : vector<1x32xf32> to vector<2x32xf32>
    %232 = arith.mulf %230, %231 : vector<2x32xf32>
    %233 = arith.addf %227, %232 : vector<2x32xf32>
    %234 = vector.extract_strided_slice %198 {offsets = [0, 5], sizes = [2, 1], strides = [1, 1]} : vector<2x8xf32> to vector<2x1xf32>
    %235 = vector.extract_strided_slice %0 {offsets = [5, 0], sizes = [1, 32], strides = [1, 1]} : vector<8x32xf32> to vector<1x32xf32>
    %236 = vector.broadcast %234 : vector<2x1xf32> to vector<2x32xf32>
    %237 = vector.broadcast %235 : vector<1x32xf32> to vector<2x32xf32>
    %238 = arith.mulf %236, %237 : vector<2x32xf32>
    %239 = arith.addf %233, %238 : vector<2x32xf32>
    %240 = vector.extract_strided_slice %198 {offsets = [0, 6], sizes = [2, 1], strides = [1, 1]} : vector<2x8xf32> to vector<2x1xf32>
    %241 = vector.extract_strided_slice %0 {offsets = [6, 0], sizes = [1, 32], strides = [1, 1]} : vector<8x32xf32> to vector<1x32xf32>
    %242 = vector.broadcast %240 : vector<2x1xf32> to vector<2x32xf32>
    %243 = vector.broadcast %241 : vector<1x32xf32> to vector<2x32xf32>
    %244 = arith.mulf %242, %243 : vector<2x32xf32>
    %245 = arith.addf %239, %244 : vector<2x32xf32>
    %246 = vector.extract_strided_slice %198 {offsets = [0, 7], sizes = [2, 1], strides = [1, 1]} : vector<2x8xf32> to vector<2x1xf32>
    %247 = vector.extract_strided_slice %0 {offsets = [7, 0], sizes = [1, 32], strides = [1, 1]} : vector<8x32xf32> to vector<1x32xf32>
    %248 = vector.broadcast %246 : vector<2x1xf32> to vector<2x32xf32>
    %249 = vector.broadcast %247 : vector<1x32xf32> to vector<2x32xf32>
    %250 = arith.mulf %248, %249 : vector<2x32xf32>
    %251 = arith.addf %245, %250 : vector<2x32xf32>
    %252 = math.tanh %251 : vector<2x32xf32>
    %cst_24 = arith.constant dense<0.000000e+00> : vector<2x8xf32>
    %253 = tpu.matmul %252, %1, %cst_24 {dimension_numbers = #tpu.dot_dimension_numbers<[1], [0], [0], [1], [0, 0, 1, 1], [], []>} : vector<2x32xf32>, vector<32x8xf32>, vector<2x8xf32> -> vector<2x8xf32>
    %254 = vector.broadcast %2 : vector<1x8xf32> to vector<2x8xf32>
    %255 = arith.addf %253, %254 : vector<2x8xf32>
    %256 = vector.extract_strided_slice %6 {offsets = [3, 0], sizes = [1, 1], strides = [1, 1]} : vector<7x1xf32> to vector<1x1xf32>
    %257 = vector.broadcast %256 : vector<1x1xf32> to vector<2x8xf32>
    %258 = arith.mulf %257, %255 : vector<2x8xf32>
    %259 = arith.addf %198, %258 : vector<2x8xf32>
    %c4 = arith.constant 4 : index
    %c0_25 = arith.constant 0 : index
    %c0_26 = arith.constant 0 : index
    %260 = vector.load %arg8[%c4, %c0_25, %c0_26] : memref<8x2x8xf32, #tpu.memory_space<vmem>>, vector<1x2x8xf32>
    %261 = vector.shape_cast %260 : vector<1x2x8xf32> to vector<2x8xf32>
    %262 = vector.shape_cast %259 : vector<2x8xf32> to vector<1x2x8xf32>
    tpu.vector_store %arg8[%c4, %c0_25, %c0_26], %262 {strides = array<i32>} : memref<8x2x8xf32, #tpu.memory_space<vmem>>, vector<1x2x8xf32>,
    %263 = vector.extract_strided_slice %14 {offsets = [4, 0], sizes = [1, 32], strides = [1, 1]} : vector<7x32xf32> to vector<1x32xf32>
    %264 = vector.extract_strided_slice %259 {offsets = [0, 0], sizes = [2, 1], strides = [1, 1]} : vector<2x8xf32> to vector<2x1xf32>
    %265 = vector.extract_strided_slice %0 {offsets = [0, 0], sizes = [1, 32], strides = [1, 1]} : vector<8x32xf32> to vector<1x32xf32>
    %266 = vector.broadcast %264 : vector<2x1xf32> to vector<2x32xf32>
    %267 = vector.broadcast %265 : vector<1x32xf32> to vector<2x32xf32>
    %268 = arith.mulf %266, %267 : vector<2x32xf32>
    %269 = vector.broadcast %263 : vector<1x32xf32> to vector<2x32xf32>
    %270 = arith.addf %269, %268 : vector<2x32xf32>
    %271 = vector.extract_strided_slice %259 {offsets = [0, 1], sizes = [2, 1], strides = [1, 1]} : vector<2x8xf32> to vector<2x1xf32>
    %272 = vector.extract_strided_slice %0 {offsets = [1, 0], sizes = [1, 32], strides = [1, 1]} : vector<8x32xf32> to vector<1x32xf32>
    %273 = vector.broadcast %271 : vector<2x1xf32> to vector<2x32xf32>
    %274 = vector.broadcast %272 : vector<1x32xf32> to vector<2x32xf32>
    %275 = arith.mulf %273, %274 : vector<2x32xf32>
    %276 = arith.addf %270, %275 : vector<2x32xf32>
    %277 = vector.extract_strided_slice %259 {offsets = [0, 2], sizes = [2, 1], strides = [1, 1]} : vector<2x8xf32> to vector<2x1xf32>
    %278 = vector.extract_strided_slice %0 {offsets = [2, 0], sizes = [1, 32], strides = [1, 1]} : vector<8x32xf32> to vector<1x32xf32>
    %279 = vector.broadcast %277 : vector<2x1xf32> to vector<2x32xf32>
    %280 = vector.broadcast %278 : vector<1x32xf32> to vector<2x32xf32>
    %281 = arith.mulf %279, %280 : vector<2x32xf32>
    %282 = arith.addf %276, %281 : vector<2x32xf32>
    %283 = vector.extract_strided_slice %259 {offsets = [0, 3], sizes = [2, 1], strides = [1, 1]} : vector<2x8xf32> to vector<2x1xf32>
    %284 = vector.extract_strided_slice %0 {offsets = [3, 0], sizes = [1, 32], strides = [1, 1]} : vector<8x32xf32> to vector<1x32xf32>
    %285 = vector.broadcast %283 : vector<2x1xf32> to vector<2x32xf32>
    %286 = vector.broadcast %284 : vector<1x32xf32> to vector<2x32xf32>
    %287 = arith.mulf %285, %286 : vector<2x32xf32>
    %288 = arith.addf %282, %287 : vector<2x32xf32>
    %289 = vector.extract_strided_slice %259 {offsets = [0, 4], sizes = [2, 1], strides = [1, 1]} : vector<2x8xf32> to vector<2x1xf32>
    %290 = vector.extract_strided_slice %0 {offsets = [4, 0], sizes = [1, 32], strides = [1, 1]} : vector<8x32xf32> to vector<1x32xf32>
    %291 = vector.broadcast %289 : vector<2x1xf32> to vector<2x32xf32>
    %292 = vector.broadcast %290 : vector<1x32xf32> to vector<2x32xf32>
    %293 = arith.mulf %291, %292 : vector<2x32xf32>
    %294 = arith.addf %288, %293 : vector<2x32xf32>
    %295 = vector.extract_strided_slice %259 {offsets = [0, 5], sizes = [2, 1], strides = [1, 1]} : vector<2x8xf32> to vector<2x1xf32>
    %296 = vector.extract_strided_slice %0 {offsets = [5, 0], sizes = [1, 32], strides = [1, 1]} : vector<8x32xf32> to vector<1x32xf32>
    %297 = vector.broadcast %295 : vector<2x1xf32> to vector<2x32xf32>
    %298 = vector.broadcast %296 : vector<1x32xf32> to vector<2x32xf32>
    %299 = arith.mulf %297, %298 : vector<2x32xf32>
    %300 = arith.addf %294, %299 : vector<2x32xf32>
    %301 = vector.extract_strided_slice %259 {offsets = [0, 6], sizes = [2, 1], strides = [1, 1]} : vector<2x8xf32> to vector<2x1xf32>
    %302 = vector.extract_strided_slice %0 {offsets = [6, 0], sizes = [1, 32], strides = [1, 1]} : vector<8x32xf32> to vector<1x32xf32>
    %303 = vector.broadcast %301 : vector<2x1xf32> to vector<2x32xf32>
    %304 = vector.broadcast %302 : vector<1x32xf32> to vector<2x32xf32>
    %305 = arith.mulf %303, %304 : vector<2x32xf32>
    %306 = arith.addf %300, %305 : vector<2x32xf32>
    %307 = vector.extract_strided_slice %259 {offsets = [0, 7], sizes = [2, 1], strides = [1, 1]} : vector<2x8xf32> to vector<2x1xf32>
    %308 = vector.extract_strided_slice %0 {offsets = [7, 0], sizes = [1, 32], strides = [1, 1]} : vector<8x32xf32> to vector<1x32xf32>
    %309 = vector.broadcast %307 : vector<2x1xf32> to vector<2x32xf32>
    %310 = vector.broadcast %308 : vector<1x32xf32> to vector<2x32xf32>
    %311 = arith.mulf %309, %310 : vector<2x32xf32>
    %312 = arith.addf %306, %311 : vector<2x32xf32>
    %313 = math.tanh %312 : vector<2x32xf32>
    %cst_27 = arith.constant dense<0.000000e+00> : vector<2x8xf32>
    %314 = tpu.matmul %313, %1, %cst_27 {dimension_numbers = #tpu.dot_dimension_numbers<[1], [0], [0], [1], [0, 0, 1, 1], [], []>} : vector<2x32xf32>, vector<32x8xf32>, vector<2x8xf32> -> vector<2x8xf32>
    %315 = vector.broadcast %2 : vector<1x8xf32> to vector<2x8xf32>
    %316 = arith.addf %314, %315 : vector<2x8xf32>
    %317 = vector.extract_strided_slice %6 {offsets = [4, 0], sizes = [1, 1], strides = [1, 1]} : vector<7x1xf32> to vector<1x1xf32>
    %318 = vector.broadcast %317 : vector<1x1xf32> to vector<2x8xf32>
    %319 = arith.mulf %318, %316 : vector<2x8xf32>
    %320 = arith.addf %259, %319 : vector<2x8xf32>
    %c5 = arith.constant 5 : index
    %c0_28 = arith.constant 0 : index
    %c0_29 = arith.constant 0 : index
    %321 = vector.load %arg8[%c5, %c0_28, %c0_29] : memref<8x2x8xf32, #tpu.memory_space<vmem>>, vector<1x2x8xf32>
    %322 = vector.shape_cast %321 : vector<1x2x8xf32> to vector<2x8xf32>
    %323 = vector.shape_cast %320 : vector<2x8xf32> to vector<1x2x8xf32>
    tpu.vector_store %arg8[%c5, %c0_28, %c0_29], %323 {strides = array<i32>} : memref<8x2x8xf32, #tpu.memory_space<vmem>>, vector<1x2x8xf32>,
    %324 = vector.extract_strided_slice %14 {offsets = [5, 0], sizes = [1, 32], strides = [1, 1]} : vector<7x32xf32> to vector<1x32xf32>
    %325 = vector.extract_strided_slice %320 {offsets = [0, 0], sizes = [2, 1], strides = [1, 1]} : vector<2x8xf32> to vector<2x1xf32>
    %326 = vector.extract_strided_slice %0 {offsets = [0, 0], sizes = [1, 32], strides = [1, 1]} : vector<8x32xf32> to vector<1x32xf32>
    %327 = vector.broadcast %325 : vector<2x1xf32> to vector<2x32xf32>
    %328 = vector.broadcast %326 : vector<1x32xf32> to vector<2x32xf32>
    %329 = arith.mulf %327, %328 : vector<2x32xf32>
    %330 = vector.broadcast %324 : vector<1x32xf32> to vector<2x32xf32>
    %331 = arith.addf %330, %329 : vector<2x32xf32>
    %332 = vector.extract_strided_slice %320 {offsets = [0, 1], sizes = [2, 1], strides = [1, 1]} : vector<2x8xf32> to vector<2x1xf32>
    %333 = vector.extract_strided_slice %0 {offsets = [1, 0], sizes = [1, 32], strides = [1, 1]} : vector<8x32xf32> to vector<1x32xf32>
    %334 = vector.broadcast %332 : vector<2x1xf32> to vector<2x32xf32>
    %335 = vector.broadcast %333 : vector<1x32xf32> to vector<2x32xf32>
    %336 = arith.mulf %334, %335 : vector<2x32xf32>
    %337 = arith.addf %331, %336 : vector<2x32xf32>
    %338 = vector.extract_strided_slice %320 {offsets = [0, 2], sizes = [2, 1], strides = [1, 1]} : vector<2x8xf32> to vector<2x1xf32>
    %339 = vector.extract_strided_slice %0 {offsets = [2, 0], sizes = [1, 32], strides = [1, 1]} : vector<8x32xf32> to vector<1x32xf32>
    %340 = vector.broadcast %338 : vector<2x1xf32> to vector<2x32xf32>
    %341 = vector.broadcast %339 : vector<1x32xf32> to vector<2x32xf32>
    %342 = arith.mulf %340, %341 : vector<2x32xf32>
    %343 = arith.addf %337, %342 : vector<2x32xf32>
    %344 = vector.extract_strided_slice %320 {offsets = [0, 3], sizes = [2, 1], strides = [1, 1]} : vector<2x8xf32> to vector<2x1xf32>
    %345 = vector.extract_strided_slice %0 {offsets = [3, 0], sizes = [1, 32], strides = [1, 1]} : vector<8x32xf32> to vector<1x32xf32>
    %346 = vector.broadcast %344 : vector<2x1xf32> to vector<2x32xf32>
    %347 = vector.broadcast %345 : vector<1x32xf32> to vector<2x32xf32>
    %348 = arith.mulf %346, %347 : vector<2x32xf32>
    %349 = arith.addf %343, %348 : vector<2x32xf32>
    %350 = vector.extract_strided_slice %320 {offsets = [0, 4], sizes = [2, 1], strides = [1, 1]} : vector<2x8xf32> to vector<2x1xf32>
    %351 = vector.extract_strided_slice %0 {offsets = [4, 0], sizes = [1, 32], strides = [1, 1]} : vector<8x32xf32> to vector<1x32xf32>
    %352 = vector.broadcast %350 : vector<2x1xf32> to vector<2x32xf32>
    %353 = vector.broadcast %351 : vector<1x32xf32> to vector<2x32xf32>
    %354 = arith.mulf %352, %353 : vector<2x32xf32>
    %355 = arith.addf %349, %354 : vector<2x32xf32>
    %356 = vector.extract_strided_slice %320 {offsets = [0, 5], sizes = [2, 1], strides = [1, 1]} : vector<2x8xf32> to vector<2x1xf32>
    %357 = vector.extract_strided_slice %0 {offsets = [5, 0], sizes = [1, 32], strides = [1, 1]} : vector<8x32xf32> to vector<1x32xf32>
    %358 = vector.broadcast %356 : vector<2x1xf32> to vector<2x32xf32>
    %359 = vector.broadcast %357 : vector<1x32xf32> to vector<2x32xf32>
    %360 = arith.mulf %358, %359 : vector<2x32xf32>
    %361 = arith.addf %355, %360 : vector<2x32xf32>
    %362 = vector.extract_strided_slice %320 {offsets = [0, 6], sizes = [2, 1], strides = [1, 1]} : vector<2x8xf32> to vector<2x1xf32>
    %363 = vector.extract_strided_slice %0 {offsets = [6, 0], sizes = [1, 32], strides = [1, 1]} : vector<8x32xf32> to vector<1x32xf32>
    %364 = vector.broadcast %362 : vector<2x1xf32> to vector<2x32xf32>
    %365 = vector.broadcast %363 : vector<1x32xf32> to vector<2x32xf32>
    %366 = arith.mulf %364, %365 : vector<2x32xf32>
    %367 = arith.addf %361, %366 : vector<2x32xf32>
    %368 = vector.extract_strided_slice %320 {offsets = [0, 7], sizes = [2, 1], strides = [1, 1]} : vector<2x8xf32> to vector<2x1xf32>
    %369 = vector.extract_strided_slice %0 {offsets = [7, 0], sizes = [1, 32], strides = [1, 1]} : vector<8x32xf32> to vector<1x32xf32>
    %370 = vector.broadcast %368 : vector<2x1xf32> to vector<2x32xf32>
    %371 = vector.broadcast %369 : vector<1x32xf32> to vector<2x32xf32>
    %372 = arith.mulf %370, %371 : vector<2x32xf32>
    %373 = arith.addf %367, %372 : vector<2x32xf32>
    %374 = math.tanh %373 : vector<2x32xf32>
    %cst_30 = arith.constant dense<0.000000e+00> : vector<2x8xf32>
    %375 = tpu.matmul %374, %1, %cst_30 {dimension_numbers = #tpu.dot_dimension_numbers<[1], [0], [0], [1], [0, 0, 1, 1], [], []>} : vector<2x32xf32>, vector<32x8xf32>, vector<2x8xf32> -> vector<2x8xf32>
    %376 = vector.broadcast %2 : vector<1x8xf32> to vector<2x8xf32>
    %377 = arith.addf %375, %376 : vector<2x8xf32>
    %378 = vector.extract_strided_slice %6 {offsets = [5, 0], sizes = [1, 1], strides = [1, 1]} : vector<7x1xf32> to vector<1x1xf32>
    %379 = vector.broadcast %378 : vector<1x1xf32> to vector<2x8xf32>
    %380 = arith.mulf %379, %377 : vector<2x8xf32>
    %381 = arith.addf %320, %380 : vector<2x8xf32>
    %c6 = arith.constant 6 : index
    %c0_31 = arith.constant 0 : index
    %c0_32 = arith.constant 0 : index
    %382 = vector.load %arg8[%c6, %c0_31, %c0_32] : memref<8x2x8xf32, #tpu.memory_space<vmem>>, vector<1x2x8xf32>
    %383 = vector.shape_cast %382 : vector<1x2x8xf32> to vector<2x8xf32>
    %384 = vector.shape_cast %381 : vector<2x8xf32> to vector<1x2x8xf32>
    tpu.vector_store %arg8[%c6, %c0_31, %c0_32], %384 {strides = array<i32>} : memref<8x2x8xf32, #tpu.memory_space<vmem>>, vector<1x2x8xf32>,
    %385 = vector.extract_strided_slice %14 {offsets = [6, 0], sizes = [1, 32], strides = [1, 1]} : vector<7x32xf32> to vector<1x32xf32>
    %386 = vector.extract_strided_slice %381 {offsets = [0, 0], sizes = [2, 1], strides = [1, 1]} : vector<2x8xf32> to vector<2x1xf32>
    %387 = vector.extract_strided_slice %0 {offsets = [0, 0], sizes = [1, 32], strides = [1, 1]} : vector<8x32xf32> to vector<1x32xf32>
    %388 = vector.broadcast %386 : vector<2x1xf32> to vector<2x32xf32>
    %389 = vector.broadcast %387 : vector<1x32xf32> to vector<2x32xf32>
    %390 = arith.mulf %388, %389 : vector<2x32xf32>
    %391 = vector.broadcast %385 : vector<1x32xf32> to vector<2x32xf32>
    %392 = arith.addf %391, %390 : vector<2x32xf32>
    %393 = vector.extract_strided_slice %381 {offsets = [0, 1], sizes = [2, 1], strides = [1, 1]} : vector<2x8xf32> to vector<2x1xf32>
    %394 = vector.extract_strided_slice %0 {offsets = [1, 0], sizes = [1, 32], strides = [1, 1]} : vector<8x32xf32> to vector<1x32xf32>
    %395 = vector.broadcast %393 : vector<2x1xf32> to vector<2x32xf32>
    %396 = vector.broadcast %394 : vector<1x32xf32> to vector<2x32xf32>
    %397 = arith.mulf %395, %396 : vector<2x32xf32>
    %398 = arith.addf %392, %397 : vector<2x32xf32>
    %399 = vector.extract_strided_slice %381 {offsets = [0, 2], sizes = [2, 1], strides = [1, 1]} : vector<2x8xf32> to vector<2x1xf32>
    %400 = vector.extract_strided_slice %0 {offsets = [2, 0], sizes = [1, 32], strides = [1, 1]} : vector<8x32xf32> to vector<1x32xf32>
    %401 = vector.broadcast %399 : vector<2x1xf32> to vector<2x32xf32>
    %402 = vector.broadcast %400 : vector<1x32xf32> to vector<2x32xf32>
    %403 = arith.mulf %401, %402 : vector<2x32xf32>
    %404 = arith.addf %398, %403 : vector<2x32xf32>
    %405 = vector.extract_strided_slice %381 {offsets = [0, 3], sizes = [2, 1], strides = [1, 1]} : vector<2x8xf32> to vector<2x1xf32>
    %406 = vector.extract_strided_slice %0 {offsets = [3, 0], sizes = [1, 32], strides = [1, 1]} : vector<8x32xf32> to vector<1x32xf32>
    %407 = vector.broadcast %405 : vector<2x1xf32> to vector<2x32xf32>
    %408 = vector.broadcast %406 : vector<1x32xf32> to vector<2x32xf32>
    %409 = arith.mulf %407, %408 : vector<2x32xf32>
    %410 = arith.addf %404, %409 : vector<2x32xf32>
    %411 = vector.extract_strided_slice %381 {offsets = [0, 4], sizes = [2, 1], strides = [1, 1]} : vector<2x8xf32> to vector<2x1xf32>
    %412 = vector.extract_strided_slice %0 {offsets = [4, 0], sizes = [1, 32], strides = [1, 1]} : vector<8x32xf32> to vector<1x32xf32>
    %413 = vector.broadcast %411 : vector<2x1xf32> to vector<2x32xf32>
    %414 = vector.broadcast %412 : vector<1x32xf32> to vector<2x32xf32>
    %415 = arith.mulf %413, %414 : vector<2x32xf32>
    %416 = arith.addf %410, %415 : vector<2x32xf32>
    %417 = vector.extract_strided_slice %381 {offsets = [0, 5], sizes = [2, 1], strides = [1, 1]} : vector<2x8xf32> to vector<2x1xf32>
    %418 = vector.extract_strided_slice %0 {offsets = [5, 0], sizes = [1, 32], strides = [1, 1]} : vector<8x32xf32> to vector<1x32xf32>
    %419 = vector.broadcast %417 : vector<2x1xf32> to vector<2x32xf32>
    %420 = vector.broadcast %418 : vector<1x32xf32> to vector<2x32xf32>
    %421 = arith.mulf %419, %420 : vector<2x32xf32>
    %422 = arith.addf %416, %421 : vector<2x32xf32>
    %423 = vector.extract_strided_slice %381 {offsets = [0, 6], sizes = [2, 1], strides = [1, 1]} : vector<2x8xf32> to vector<2x1xf32>
    %424 = vector.extract_strided_slice %0 {offsets = [6, 0], sizes = [1, 32], strides = [1, 1]} : vector<8x32xf32> to vector<1x32xf32>
    %425 = vector.broadcast %423 : vector<2x1xf32> to vector<2x32xf32>
    %426 = vector.broadcast %424 : vector<1x32xf32> to vector<2x32xf32>
    %427 = arith.mulf %425, %426 : vector<2x32xf32>
    %428 = arith.addf %422, %427 : vector<2x32xf32>
    %429 = vector.extract_strided_slice %381 {offsets = [0, 7], sizes = [2, 1], strides = [1, 1]} : vector<2x8xf32> to vector<2x1xf32>
    %430 = vector.extract_strided_slice %0 {offsets = [7, 0], sizes = [1, 32], strides = [1, 1]} : vector<8x32xf32> to vector<1x32xf32>
    %431 = vector.broadcast %429 : vector<2x1xf32> to vector<2x32xf32>
    %432 = vector.broadcast %430 : vector<1x32xf32> to vector<2x32xf32>
    %433 = arith.mulf %431, %432 : vector<2x32xf32>
    %434 = arith.addf %428, %433 : vector<2x32xf32>
    %435 = math.tanh %434 : vector<2x32xf32>
    %cst_33 = arith.constant dense<0.000000e+00> : vector<2x8xf32>
    %436 = tpu.matmul %435, %1, %cst_33 {dimension_numbers = #tpu.dot_dimension_numbers<[1], [0], [0], [1], [0, 0, 1, 1], [], []>} : vector<2x32xf32>, vector<32x8xf32>, vector<2x8xf32> -> vector<2x8xf32>
    %437 = vector.broadcast %2 : vector<1x8xf32> to vector<2x8xf32>
    %438 = arith.addf %436, %437 : vector<2x8xf32>
    %439 = vector.extract_strided_slice %6 {offsets = [6, 0], sizes = [1, 1], strides = [1, 1]} : vector<7x1xf32> to vector<1x1xf32>
    %440 = vector.broadcast %439 : vector<1x1xf32> to vector<2x8xf32>
    %441 = arith.mulf %440, %438 : vector<2x8xf32>
    %442 = arith.addf %381, %441 : vector<2x8xf32>
    %c7 = arith.constant 7 : index
    %c0_34 = arith.constant 0 : index
    %c0_35 = arith.constant 0 : index
    %443 = vector.load %arg8[%c7, %c0_34, %c0_35] : memref<8x2x8xf32, #tpu.memory_space<vmem>>, vector<1x2x8xf32>
    %444 = vector.shape_cast %443 : vector<1x2x8xf32> to vector<2x8xf32>
    %445 = vector.shape_cast %442 : vector<2x8xf32> to vector<1x2x8xf32>
    tpu.vector_store %arg8[%c7, %c0_34, %c0_35], %445 {strides = array<i32>} : memref<8x2x8xf32, #tpu.memory_space<vmem>>, vector<1x2x8xf32>,
    return
  }
  func.func @transform_0(%arg0: i32) -> (i32, i32) {
    %c0_i32 = arith.constant 0 : i32
    %c0_i32_0 = arith.constant 0 : i32
    %c0_i32_1 = arith.constant 0 : i32
    return %c0_i32, %c0_i32_0 : i32, i32
  }
  func.func @transform_1(%arg0: i32) -> (i32, i32) {
    %c0_i32 = arith.constant 0 : i32
    %c0_i32_0 = arith.constant 0 : i32
    return %arg0, %c0_i32 : i32, i32
  }
  func.func @transform_2(%arg0: i32) -> (i32, i32) {
    %c0_i32 = arith.constant 0 : i32
    %c0_i32_0 = arith.constant 0 : i32
    %c0_i32_1 = arith.constant 0 : i32
    return %c0_i32, %c0_i32_0 : i32, i32
  }
  func.func @transform_3(%arg0: i32) -> (i32, i32) {
    %c0_i32 = arith.constant 0 : i32
    %c0_i32_0 = arith.constant 0 : i32
    %c0_i32_1 = arith.constant 0 : i32
    return %c0_i32, %c0_i32_0 : i32, i32
  }
  func.func @transform_4(%arg0: i32) -> (i32, i32) {
    %c0_i32 = arith.constant 0 : i32
    %c0_i32_0 = arith.constant 0 : i32
    %c0_i32_1 = arith.constant 0 : i32
    return %c0_i32, %c0_i32_0 : i32, i32
  }
  func.func @transform_5(%arg0: i32) -> (i32, i32) {
    %c0_i32 = arith.constant 0 : i32
    %c0_i32_0 = arith.constant 0 : i32
    %c0_i32_1 = arith.constant 0 : i32
    return %c0_i32, %c0_i32_0 : i32, i32
  }
  func.func @transform_6(%arg0: i32) -> (i32, i32) {
    %c0_i32 = arith.constant 0 : i32
    %c0_i32_0 = arith.constant 0 : i32
    %c0_i32_1 = arith.constant 0 : i32
    return %c0_i32, %c0_i32_0 : i32, i32
  }
  func.func @transform_7(%arg0: i32) -> (i32, i32, i32) {
    %c0_i32 = arith.constant 0 : i32
    %c0_i32_0 = arith.constant 0 : i32
    %c0_i32_1 = arith.constant 0 : i32
    return %c0_i32, %arg0, %c0_i32_0 : i32, i32, i32
  }
}

</mosaic_0001>

<bundles_post_ra>
// kernel: tpu_custom_call.1
= control target key start
LH: loop header
LB: loop body
LE: loop exit
PB: predicated region body
PF: predicated region fallthrough
CT: control target
= control target key end

     0   :  { %v1349_v2 = vmov 1   ;;  %v1350_v3 = vmov 0   ;;  %s1708_s0 = inlined_call_operand.vmem [shape: f32[8,1], index: 0, kind: input, shape index: {}]   ;;  %s1709_s1 = inlined_call_operand.vmem [shape: f32[2,8], index: 1, kind: input, shape index: {}]   ;;  %s1710_s2 = inlined_call_operand.vmem [shape: f32[8,32], index: 2, kind: input, shape index: {}]   ;;  %s1711_s3 = inlined_call_operand.vmem [shape: f32[1,32], index: 3, kind: input, shape index: {}]   ;;  %s1712_s4 = inlined_call_operand.vmem [shape: f32[1,32], index: 4, kind: input, shape index: {}]   ;;  %s1713_s5 = inlined_call_operand.vmem [shape: f32[32,8], index: 5, kind: input, shape index: {}]   ;;  %s1714_s6 = inlined_call_operand.vmem [shape: f32[1,8], index: 6, kind: input, shape index: {}]   ;;  %s1715_s7 = inlined_call_operand.hbm [shape: f32[8,2,8], index: 7, kind: output, shape index: {}]  }
   0x1   :  { %v1406_v0 = vld [vmem:[%s1709_s1] sm:$0x3]  ;;  %1255 = vset.pattern.permute.xlu1 %v1349_v2  ;;  %1254 = vset.pattern.permute.xlu0 %v1350_v3 }
   0x2   :  { %v33_v1 = vld [vmem:[%s1708_s0] sm:$0xff]  ;;  %77 = vperm.xlu1 %1255, %v1406_v0  }
   0x3   :  { %41 = vperm.xlu0 %1254, %v33_v1  }
   0x4   :  { %12 = vsyncpa [#allocation3], 0  ;;  %v1351_v4 = vmov 2   ;;  %v1352_v5 = vmov 3   ;;  %v1353_v6 = vmov 4   ;;  %v1354_v7 = vmov 6  }
   0x5   :  { %v1355_v8 = vmov 5   ;;  %v1356_v9 = vmov 7   ;;  %v28_v10 = vld [vmem:[%s1713_s5] sm:$0xff]  ;;  %v29_v11 = vld [vmem:[%s1713_s5 + $0x8] sm:$0xff]  ;;  %v30_v12 = vld [vmem:[%s1713_s5 + $0x10] sm:$0xff]  ;;  %v1357_v13 = vmov 0.0|0.0   ;;  %v66_v21 = vlaneseq }
   0x6   :  { %1256 = vset.pattern.permute.xlu1 %v1351_v4  ;;  %1184 = vmatprep.subr.bf16.mxu0 %v1357_v13  ;;  %v1439_v14 = vpack.c.bf16 %v29_v11, %v28_v10  ;;  %v31_v15 = vld [vmem:[%s1713_s5 + $0x18] sm:$0xff]  ;;  %vm1358_vm0 = vmmov 0   ;;  %v1359_v16 = vmov 0.0   ;;  %v35_v17 = vrot.slane %v33_v1, 7  ;;  %v1062_v24 = vld [vmem:[%s1712_s4] ss:$0 sm:$0xff] }
   0x7   :  { %63 = vperm.xlu0 %1254, %v1406_v0   ;;  %87 = vperm.xlu1 %1256, %v1406_v0   ;;  %v1450_v18 = vpack.c.bf16 %v31_v15, %v30_v12  ;;  %v1462_v22 = vshrl.u32 %v66_v21, 7  ;;  %v27_v27 = vld [vmem:[%s1710_s2] sm:$0xff]  ;;  %vm153_vm1 = vcmask 261120   ;;  %vm59_vm2 = vcmask 58368   ;;  %s1360_s21 = smov [#allocation2]  }
   0x8   :  { %1115 = vmatprep.mubr.msk.f32.mxu0 %vm1358_vm0, %v1359_v16  ;;  %1190 = vmatprep.subr.bf16.mxu1 %v1357_v13  ;;  %v1455_v19 = vsub.f32 %v33_v1, %v35_v17  ;;  %v1063_v28 = vld [vmem:[%s1711_s3] ss:$0 sm:$0xff]  ;;  %60 = vst.msk [vmem:[#allocation2] sm:$0x3] %vm59_vm2, %v1406_v0  ;;  %s1051_s22 = sshll.u32 %s1360_s21, 4  ;;  %s1052_s22 = int_to_ptr.vmem [resolvable:$true] %s1051_s22 }
   0x9   :  { %1126 = vmatprep.mubr.msk.f32.mxu1 %vm1358_vm0, %v1359_v16  ;;  %1186 = vmatpush3.bf16.msra.mxu0 %v1439_v14  ;;  %v68_v23 = vsub.s32 0, %v1462_v22  ;;  %v82_v25 = vsub.s32 1, %v1462_v22  ;;  %v92_v32 = vsub.s32 2, %v1462_v22  ;;  %v102_v36 = vsub.s32 3, %v1462_v22  ;;  %v1532_v21 = vld [vmem:[%s1714_s6] ss:$0 sm:$0xff]  ;;  %p1330_p1 = scmp.lt.s32.totalorder %s1052_s22, %s1052_s22 }
   0xa   :  { %1192 = vmatpush3.bf16.msra.mxu1 %v1439_v14  ;;  %1187 = vmatprep.subr.bf16.mxu0 %v1357_v13  ;;  %v228_v20 = vrot.slane %v1455_v19, 1  ;;  %v112_v44 = vsub.s32 4, %v1462_v22  ;;  %v122_v51 = vsub.s32 5, %v1462_v22  ;;  %v132_v52 = vsub.s32 6, %v1462_v22  ;;  %s1325_s23 = scalar_lea.vmem %s1052_s22, 256 }
   0xb   :  { %1257 = vset.pattern.permute.xlu0 %v1352_v5  ;;  %1258 = vset.pattern.permute.xlu1 %v1353_v6  ;;  %v1475_v31 = vrot.slane %v27_v27, %v68_v23  ;;  %v1480_v33 = vrot.slane %v27_v27, %v82_v25  ;;  %v1489_v40 = vrot.slane %v27_v27, %v92_v32  ;;  %v142_v58 = vsub.s32 7, %v1462_v22  ;;  %p1326_p0 = scmp.ne.s32.totalorder %s1052_s22, %s1325_s23  ;;  %p1331_p2 = scmp.lt.s32.totalorder %s1325_s23, %s1325_s23 }
   0xc   :  { %97 = vperm.xlu0 %1257, %v1406_v0   ;;  %107 = vperm.xlu1 %1258, %v1406_v0   ;;  %1226 = vpush %v228_v20  ;;  %v1493_v41 = vrot.slane %v27_v27, %v102_v36  ;;  %v1500_v47 = vrot.slane %v27_v27, %v112_v44 }
   0xd   :  { %1193 = vmatprep.subr.bf16.mxu1 %v1357_v13  ;;  %1189 = vmatpush3.bf16.msra.mxu0 %v1450_v18  ;;  %v1507_v54 = vrot.slane %v27_v27, %v122_v51  ;;  %v1511_v55 = vrot.slane %v27_v27, %v132_v52  ;;  %v1517_v1 = vrot.slane %v27_v27, %v142_v58  ;;  %p1332_p3 = por %p1331_p2, %p1330_p1 }
   0xe   :  { %1195 = vmatpush3.bf16.msra.mxu1 %v1450_v18  ;;  %1196 = vmatprep.subr.bf16.mxu0 %v1357_v13 }
   0xf   :  { %1202 = vmatprep.subr.bf16.mxu1 %v1357_v13  ;;  %p1333_p4 = pnand %p1332_p3, %p1326_p0 }
  0x10   :  { %1260 = vset.pattern.permute.xlu0 %v1354_v7  ;;  %1259 = vset.pattern.permute.xlu1 %v1355_v8 }
  0x11   :  { %127 = vperm.xlu0 %1260, %v1406_v0   ;;  %117 = vperm.xlu1 %1259, %v1406_v0  }
  0x15   :  { %1263 = vset.pattern.permute.xlu0 %v1349_v2  ;;  %1261 = vset.pattern.permute.xlu1 %v1356_v9 }
  0x16   :  { %137 = vperm.xlu1 %1261, %v1406_v0  }
  0x1a   :  { %1262 = vset.pattern.permute.xlu1 %v1350_v3 }
  0x3d   :  { %s1227_s2 = spop %1226 }
  0x81   :  { %v78_v26 = vpop.permute.xlu1 %77 }
  0x82   :  { %v42_v29 = vpop.permute.xlu0 %41  ;;  %v84_v42 = vmul.f32 %v1480_v33, %v78_v26 }
  0x83   :  { %v50_v30 = vmul.f32 %v1062_v24, %v42_v29  ;;  %v230_v24 = vstv %s1227_s2 }
  0x85   :  { %v1482_v34 = vadd.f32 %v1063_v28, %v50_v30 }
  0x86   :  { %v64_v35 = vpop.permute.xlu0 %63  ;;  %v88_v39 = vpop.permute.xlu1 %87 }
  0x87   :  { %v74_v37 = vrot.slane %v1482_v34, %v68_v23  ;;  %v70_v38 = vmul.f32 %v1475_v31, %v64_v35  ;;  %v94_v46 = vmul.f32 %v1489_v40, %v88_v39  ;;  %v245_v35 = vrot.slane %v1482_v34, %v82_v25 }
  0x89   :  { %v75_v43 = vadd.f32 %v74_v37, %v70_v38 }
  0x8b   :  { %v85_v45 = vadd.f32 %v84_v42, %v75_v43  ;;  %v98_v48 = vpop.permute.xlu0 %97  ;;  %v108_v49 = vpop.permute.xlu1 %107 }
  0x8c   :  { %v104_v50 = vmul.f32 %v1493_v41, %v98_v48  ;;  %v114_v56 = vmul.f32 %v1500_v47, %v108_v49 }
  0x8d   :  { %v95_v53 = vadd.f32 %v94_v46, %v85_v45 }
  0x8f   :  { %v105_v57 = vadd.f32 %v104_v50, %v95_v53 }
  0x90   :  { %v128_v59 = vpop.permute.xlu0 %127  ;;  %v118_v60 = vpop.permute.xlu1 %117 }
  0x91   :  { %v115_v61 = vadd.f32 %v114_v56, %v105_v57  ;;  %v124_v62 = vmul.f32 %v1507_v54, %v118_v60  ;;  %v134_v63 = vmul.f32 %v1511_v55, %v128_v59 }
  0x93   :  { %v125_v10 = vadd.f32 %v124_v62, %v115_v61 }
  0x95   :  { %v135_v11 = vadd.f32 %v134_v63, %v125_v10  ;;  %v138_v12 = vpop.permute.xlu1 %137 }
  0x96   :  { %v144_v15 = vmul.f32 %v1517_v1, %v138_v12 }
  0x98   :  { %v145_v17 = vadd.f32 %v144_v15, %v135_v11 }
  0x9a   :  { %1311 = vtanh.f32 %v145_v17 }
  0xa4   :  { %v1312_v20 = vpop.eup %1311 }
  0xa5   :  { %1116 = vmatmul.mubr.msk.f32.vlgmr.msra.gmra.mrb[0].mxu0 %vm153_vm1, %v1312_v20 }
  0xa6   :  { %1198 = vmatpush3.bf16.msra.mxu0 %v1439_v14  ;;  %1137 = vmatprep.mubr.msk.f32.mxu0 %vm1358_vm0, %v1359_v16 }
  0xa7   :  { %1199 = vmatprep.subr.bf16.mxu0 %v1357_v13 }
  0xaa   :  { %1201 = vmatpush3.bf16.msra.mxu0 %v1450_v18 }
  0xab   :  { %1208 = vmatprep.subr.bf16.mxu0 %v1357_v13 }
 0x178   :  { %v223_v23 = vpop.f32.mrb[0].mxu0 }
 0x179   :  { %v224_v26 = vadd.f32 %v1532_v21, %v223_v23  ;;  %v1117_v27 = vpop.f32.mrb[1].mxu0 }
 0x17b   :  { %v232_v28 = vmul.f32 %v230_v24, %v224_v26 }
 0x17d   :  { %v233_v29 = vadd.f32 %v232_v28, %v1406_v0  ;;  %v363_v0 = vrot.slane %v1455_v19, 2  ;;  %v498_v28 = vrot.slane %v1455_v19, 3 }
 0x17f   :  { %248 = vperm.xlu0 %1263, %v233_v29   ;;  %238 = vperm.xlu1 %1262, %v233_v29   ;;  %235 = vst.msk [vmem:[#allocation2 + $0x2] sm:$0x3] %vm59_vm2, %v233_v29 }
 0x180   :  { %1228 = vpush %v363_v0 }
 0x181   :  { %1230 = vpush %v498_v28  ;;  %v515_v28 = vrot.slane %v1482_v34, %v102_v36 }
 0x183   :  { %1266 = vset.pattern.permute.xlu0 %v1353_v6  ;;  %1264 = vset.pattern.permute.xlu1 %v1351_v4 }
 0x184   :  { %266 = vperm.xlu0 %1266, %v233_v29   ;;  %254 = vperm.xlu1 %1264, %v233_v29  }
 0x188   :  { %1269 = vset.pattern.permute.xlu0 %v1356_v9  ;;  %1265 = vset.pattern.permute.xlu1 %v1352_v5 }
 0x189   :  { %284 = vperm.xlu0 %1269, %v233_v29   ;;  %260 = vperm.xlu1 %1265, %v233_v29  }
 0x18d   :  { %1267 = vset.pattern.permute.xlu1 %v1355_v8  ;;  %1272 = vset.pattern.permute.xlu0 %v1351_v4 }
 0x18e   :  { %272 = vperm.xlu1 %1267, %v233_v29  }
 0x192   :  { %1268 = vset.pattern.permute.xlu1 %v1354_v7 }
 0x193   :  { %278 = vperm.xlu1 %1268, %v233_v29  }
 0x197   :  { %1270 = vset.pattern.permute.xlu1 %v1350_v3 }
 0x1b1   :  { %s1229_s6 = spop %1228 }
 0x1b2   :  { %v365_v20 = vstv %s1229_s6  ;;  %s1231_s16 = spop %1230 }
 0x1fe   :  { %v239_v30 = vpop.permute.xlu1 %238  ;;  %v249_v38 = vpop.permute.xlu0 %248 }
 0x1ff   :  { %v241_v37 = vmul.f32 %v239_v30, %v1475_v31  ;;  %v251_v42 = vmul.f32 %v249_v38, %v1480_v33  ;;  %v380_v30 = vrot.slane %v1482_v34, %v92_v32 }
 0x201   :  { %v246_v39 = vadd.f32 %v245_v35, %v241_v37 }
 0x203   :  { %v255_v43 = vpop.permute.xlu1 %254  ;;  %v252_v45 = vadd.f32 %v251_v42, %v246_v39  ;;  %v267_v53 = vpop.permute.xlu0 %266 }
 0x204   :  { %v257_v46 = vmul.f32 %v255_v43, %v1489_v40  ;;  %v269_v57 = vmul.f32 %v267_v53, %v1500_v47 }
 0x206   :  { %v258_v49 = vadd.f32 %v257_v46, %v252_v45 }
 0x208   :  { %v261_v48 = vpop.permute.xlu1 %260  ;;  %v285_v60 = vpop.permute.xlu0 %284 }
 0x209   :  { %v263_v50 = vmul.f32 %v261_v48, %v1493_v41  ;;  %v287_v10 = vmul.f32 %v285_v60, %v1517_v1 }
 0x20b   :  { %v264_v56 = vadd.f32 %v263_v50, %v258_v49 }
 0x20d   :  { %v273_v58 = vpop.permute.xlu1 %272  ;;  %v270_v25 = vadd.f32 %v269_v57, %v264_v56 }
 0x20e   :  { %v275_v59 = vmul.f32 %v273_v58, %v1507_v54 }
 0x210   :  { %v276_v62 = vadd.f32 %v275_v59, %v270_v25 }
 0x212   :  { %v279_v61 = vpop.permute.xlu1 %278 }
 0x213   :  { %v281_v63 = vmul.f32 %v279_v61, %v1511_v55 }
 0x215   :  { %v282_v11 = vadd.f32 %v281_v63, %v276_v62 }
 0x217   :  { %v288_v12 = vadd.f32 %v287_v10, %v282_v11 }
 0x219   :  { %1313 = vtanh.f32 %v288_v12  ;;  %v500_v12 = vstv %s1231_s16 }
 0x223   :  { %v1314_v15 = vpop.eup %1313 }
 0x224   :  { %1127 = vmatmul.mubr.msk.f32.vlgmr.msra.gmra.mrb[0].mxu1 %vm153_vm1, %v1314_v15 }
 0x225   :  { %1204 = vmatpush3.bf16.msra.mxu1 %v1439_v14  ;;  %1148 = vmatprep.mubr.msk.f32.mxu1 %vm1358_vm0, %v1359_v16 }
 0x226   :  { %1205 = vmatprep.subr.bf16.mxu1 %v1357_v13 }
 0x229   :  { %1207 = vmatpush3.bf16.msra.mxu1 %v1450_v18 }
 0x22a   :  { %1214 = vmatprep.subr.bf16.mxu1 %v1357_v13 }
 0x2f7   :  { %v359_v17 = vpop.f32.mrb[0].mxu1 }
 0x2f8   :  { %v360_v23 = vadd.f32 %v1532_v21, %v359_v17  ;;  %v1128_v24 = vpop.f32.mrb[1].mxu1 }
 0x2f9   :  { %v633_v24 = vrot.slane %v1455_v19, 4 }
 0x2fa   :  { %v367_v26 = vmul.f32 %v365_v20, %v360_v23 }
 0x2fb   :  { %1232 = vpush %v633_v24 }
 0x2fc   :  { %v368_v27 = vadd.f32 %v367_v26, %v233_v29 }
 0x2fe   :  { %389 = vperm.xlu0 %1272, %v368_v27   ;;  %373 = vperm.xlu1 %1270, %v368_v27   ;;  %370 = vst.msk [vmem:[#allocation2 + $0x4] sm:$0x3] %vm59_vm2, %v368_v27 }
 0x302   :  { %1275 = vset.pattern.permute.xlu0 %v1355_v8  ;;  %1271 = vset.pattern.permute.xlu1 %v1349_v2 }
 0x303   :  { %407 = vperm.xlu0 %1275, %v368_v27   ;;  %383 = vperm.xlu1 %1271, %v368_v27  }
 0x307   :  { %1273 = vset.pattern.permute.xlu1 %v1352_v5  ;;  %1278 = vset.pattern.permute.xlu0 %v1350_v3 }
 0x308   :  { %395 = vperm.xlu1 %1273, %v368_v27  }
 0x30c   :  { %1274 = vset.pattern.permute.xlu1 %v1353_v6 }
 0x30d   :  { %401 = vperm.xlu1 %1274, %v368_v27  }
 0x311   :  { %1276 = vset.pattern.permute.xlu1 %v1354_v7 }
 0x312   :  { %413 = vperm.xlu1 %1276, %v368_v27  }
 0x316   :  { %1277 = vset.pattern.permute.xlu1 %v1356_v9 }
 0x317   :  { %419 = vperm.xlu1 %1277, %v368_v27  }
 0x31b   :  { %1279 = vset.pattern.permute.xlu1 %v1349_v2 }
 0x32c   :  { %s1233_s17 = spop %1232 }
 0x37d   :  { %v374_v29 = vpop.permute.xlu1 %373  ;;  %v390_v39 = vpop.permute.xlu0 %389 }
 0x37e   :  { %v376_v0 = vmul.f32 %v374_v29, %v1475_v31  ;;  %v392_v43 = vmul.f32 %v390_v39, %v1489_v40 }
 0x380   :  { %v381_v37 = vadd.f32 %v380_v30, %v376_v0 }
 0x382   :  { %v384_v35 = vpop.permute.xlu1 %383  ;;  %v408_v56 = vpop.permute.xlu0 %407 }
 0x383   :  { %v386_v38 = vmul.f32 %v384_v35, %v1480_v33  ;;  %v410_v32 = vmul.f32 %v408_v56, %v1507_v54 }
 0x385   :  { %v387_v42 = vadd.f32 %v386_v38, %v381_v37 }
 0x387   :  { %v396_v45 = vpop.permute.xlu1 %395  ;;  %v393_v46 = vadd.f32 %v392_v43, %v387_v42 }
 0x388   :  { %v398_v48 = vmul.f32 %v396_v45, %v1493_v41 }
 0x38a   :  { %v399_v50 = vadd.f32 %v398_v48, %v393_v46 }
 0x38c   :  { %v402_v49 = vpop.permute.xlu1 %401 }
 0x38d   :  { %v404_v53 = vmul.f32 %v402_v49, %v1500_v47 }
 0x38f   :  { %v405_v57 = vadd.f32 %v404_v53, %v399_v50 }
 0x391   :  { %v414_v58 = vpop.permute.xlu1 %413  ;;  %v411_v25 = vadd.f32 %v410_v32, %v405_v57 }
 0x392   :  { %v416_v59 = vmul.f32 %v414_v58, %v1511_v55 }
 0x394   :  { %v417_v61 = vadd.f32 %v416_v59, %v411_v25 }
 0x396   :  { %v420_v60 = vpop.permute.xlu1 %419 }
 0x397   :  { %v422_v62 = vmul.f32 %v420_v60, %v1517_v1 }
 0x399   :  { %v423_v63 = vadd.f32 %v422_v62, %v417_v61  ;;  %v635_v62 = vstv %s1233_s17 }
 0x39b   :  { %1315 = vtanh.f32 %v423_v63 }
 0x3a5   :  { %v1316_v10 = vpop.eup %1315 }
 0x3a6   :  { %1138 = vmatmul.mubr.msk.f32.vlgmr.msra.gmra.mrb[2].mxu0 %vm153_vm1, %v1316_v10 }
 0x3a7   :  { %1210 = vmatpush3.bf16.msra.mxu0 %v1439_v14  ;;  %1159 = vmatprep.mubr.msk.f32.mxu0 %vm1358_vm0, %v1359_v16 }
 0x3a8   :  { %1211 = vmatprep.subr.bf16.mxu0 %v1357_v13 }
 0x3ab   :  { %1213 = vmatpush3.bf16.msra.mxu0 %v1450_v18 }
 0x3ac   :  { %1220 = vmatprep.subr.bf16.mxu0 %v1357_v13 }
 0x479   :  { %v494_v11 = vpop.f32.mrb[2].mxu0 }
 0x47a   :  { %v495_v15 = vadd.f32 %v1532_v21, %v494_v11  ;;  %v1139_v17 = vpop.f32.mrb[3].mxu0 }
 0x47c   :  { %v502_v20 = vmul.f32 %v500_v12, %v495_v15  ;;  %v768_v15 = vrot.slane %v1455_v19, 5 }
 0x47e   :  { %v503_v23 = vadd.f32 %v502_v20, %v368_v27  ;;  %1234 = vpush %v768_v15  ;;  %v650_v20 = vrot.slane %v1482_v34, %v112_v44 }
 0x480   :  { %518 = vperm.xlu1 %1279, %v503_v23   ;;  %508 = vperm.xlu0 %1278, %v503_v23   ;;  %505 = vst.msk [vmem:[#allocation2 + $0x6] sm:$0x3] %vm59_vm2, %v503_v23 }
 0x484   :  { %1280 = vset.pattern.permute.xlu1 %v1351_v4  ;;  %1281 = vset.pattern.permute.xlu0 %v1352_v5 }
 0x485   :  { %524 = vperm.xlu1 %1280, %v503_v23   ;;  %530 = vperm.xlu0 %1281, %v503_v23  }
 0x489   :  { %1282 = vset.pattern.permute.xlu1 %v1353_v6  ;;  %1284 = vset.pattern.permute.xlu0 %v1354_v7 }
 0x48a   :  { %536 = vperm.xlu1 %1282, %v503_v23   ;;  %548 = vperm.xlu0 %1284, %v503_v23  }
 0x48e   :  { %1283 = vset.pattern.permute.xlu1 %v1355_v8  ;;  %1287 = vset.pattern.permute.xlu0 %v1349_v2 }
 0x48f   :  { %542 = vperm.xlu1 %1283, %v503_v23  }
 0x493   :  { %1285 = vset.pattern.permute.xlu1 %v1356_v9 }
 0x494   :  { %554 = vperm.xlu1 %1285, %v503_v23  }
 0x498   :  { %1286 = vset.pattern.permute.xlu1 %v1350_v3 }
 0x4af   :  { %s1235_s18 = spop %1234 }
 0x4ff   :  { %v519_v26 = vpop.permute.xlu1 %518  ;;  %v509_v27 = vpop.permute.xlu0 %508 }
 0x500   :  { %v511_v29 = vmul.f32 %v509_v27, %v1475_v31  ;;  %v521_v0 = vmul.f32 %v519_v26, %v1480_v33 }
 0x502   :  { %v516_v30 = vadd.f32 %v515_v28, %v511_v29 }
 0x504   :  { %v525_v35 = vpop.permute.xlu1 %524  ;;  %v522_v37 = vadd.f32 %v521_v0, %v516_v30  ;;  %v531_v39 = vpop.permute.xlu0 %530 }
 0x505   :  { %v527_v38 = vmul.f32 %v525_v35, %v1489_v40  ;;  %v533_v43 = vmul.f32 %v531_v39, %v1493_v41 }
 0x507   :  { %v528_v42 = vadd.f32 %v527_v38, %v522_v37 }
 0x509   :  { %v537_v45 = vpop.permute.xlu1 %536  ;;  %v534_v46 = vadd.f32 %v533_v43, %v528_v42  ;;  %v549_v49 = vpop.permute.xlu0 %548 }
 0x50a   :  { %v539_v48 = vmul.f32 %v537_v45, %v1500_v47  ;;  %v551_v56 = vmul.f32 %v549_v49, %v1511_v55 }
 0x50c   :  { %v540_v36 = vadd.f32 %v539_v48, %v534_v46 }
 0x50e   :  { %v543_v50 = vpop.permute.xlu1 %542 }
 0x50f   :  { %v545_v53 = vmul.f32 %v543_v50, %v1507_v54 }
 0x511   :  { %v546_v57 = vadd.f32 %v545_v53, %v540_v36 }
 0x513   :  { %v555_v32 = vpop.permute.xlu1 %554  ;;  %v552_v58 = vadd.f32 %v551_v56, %v546_v57 }
 0x514   :  { %v557_v25 = vmul.f32 %v555_v32, %v1517_v1 }
 0x516   :  { %v558_v59 = vadd.f32 %v557_v25, %v552_v58  ;;  %v770_v58 = vstv %s1235_s18 }
 0x518   :  { %1317 = vtanh.f32 %v558_v59 }
 0x522   :  { %v1318_v60 = vpop.eup %1317 }
 0x523   :  { %1149 = vmatmul.mubr.msk.f32.vlgmr.msra.gmra.mrb[2].mxu1 %vm153_vm1, %v1318_v60 }
 0x524   :  { %1216 = vmatpush3.bf16.msra.mxu1 %v1439_v14  ;;  %1170 = vmatprep.mubr.msk.f32.mxu1 %vm1358_vm0, %v1359_v16 }
 0x525   :  { %1217 = vmatprep.subr.bf16.mxu1 %v1357_v13 }
 0x528   :  { %1219 = vmatpush3.bf16.msra.mxu1 %v1450_v18 }
 0x5f6   :  { %v629_v61 = vpop.f32.mrb[2].mxu1 }
 0x5f7   :  { %v630_v63 = vadd.f32 %v1532_v21, %v629_v61  ;;  %v1150_v10 = vpop.f32.mrb[3].mxu1 }
 0x5f9   :  { %v637_v11 = vmul.f32 %v635_v62, %v630_v63 }
 0x5fb   :  { %v638_v12 = vadd.f32 %v637_v11, %v503_v23 }
 0x5fd   :  { %653 = vperm.xlu0 %1287, %v638_v12   ;;  %643 = vperm.xlu1 %1286, %v638_v12   ;;  %640 = vst.msk [vmem:[#allocation2 + $0x8] sm:$0x3] %vm59_vm2, %v638_v12 }
 0x601   :  { %1290 = vset.pattern.permute.xlu0 %v1353_v6  ;;  %1288 = vset.pattern.permute.xlu1 %v1351_v4 }
 0x602   :  { %671 = vperm.xlu0 %1290, %v638_v12   ;;  %659 = vperm.xlu1 %1288, %v638_v12  }
 0x606   :  { %1293 = vset.pattern.permute.xlu0 %v1356_v9  ;;  %1289 = vset.pattern.permute.xlu1 %v1352_v5 }
 0x607   :  { %689 = vperm.xlu0 %1293, %v638_v12   ;;  %665 = vperm.xlu1 %1289, %v638_v12  }
 0x60b   :  { %1291 = vset.pattern.permute.xlu1 %v1355_v8  ;;  %1296 = vset.pattern.permute.xlu0 %v1351_v4 }
 0x60c   :  { %677 = vperm.xlu1 %1291, %v638_v12  }
 0x610   :  { %1292 = vset.pattern.permute.xlu1 %v1354_v7 }
 0x611   :  { %683 = vperm.xlu1 %1292, %v638_v12  }
 0x615   :  { %1294 = vset.pattern.permute.xlu1 %v1350_v3 }
 0x67c   :  { %v644_v17 = vpop.permute.xlu1 %643  ;;  %v654_v24 = vpop.permute.xlu0 %653 }
 0x67d   :  { %v646_v23 = vmul.f32 %v644_v17, %v1475_v31  ;;  %v656_v27 = vmul.f32 %v654_v24, %v1480_v33 }
 0x67f   :  { %v651_v26 = vadd.f32 %v650_v20, %v646_v23 }
 0x681   :  { %v660_v28 = vpop.permute.xlu1 %659  ;;  %v657_v29 = vadd.f32 %v656_v27, %v651_v26  ;;  %v672_v38 = vpop.permute.xlu0 %671 }
 0x682   :  { %v662_v0 = vmul.f32 %v660_v28, %v1489_v40  ;;  %v674_v42 = vmul.f32 %v672_v38, %v1500_v47 }
 0x684   :  { %v663_v35 = vadd.f32 %v662_v0, %v657_v29 }
 0x686   :  { %v666_v30 = vpop.permute.xlu1 %665  ;;  %v690_v46 = vpop.permute.xlu0 %689 }
 0x687   :  { %v668_v37 = vmul.f32 %v666_v30, %v1493_v41  ;;  %v692_v36 = vmul.f32 %v690_v46, %v1517_v1 }
 0x689   :  { %v669_v39 = vadd.f32 %v668_v37, %v663_v35 }
 0x68b   :  { %v678_v43 = vpop.permute.xlu1 %677  ;;  %v675_v44 = vadd.f32 %v674_v42, %v669_v39 }
 0x68c   :  { %v680_v45 = vmul.f32 %v678_v43, %v1507_v54 }
 0x68e   :  { %v681_v49 = vadd.f32 %v680_v45, %v675_v44 }
 0x690   :  { %v684_v48 = vpop.permute.xlu1 %683 }
 0x691   :  { %v686_v50 = vmul.f32 %v684_v48, %v1511_v55 }
 0x693   :  { %v687_v53 = vadd.f32 %v686_v50, %v681_v49 }
 0x695   :  { %v693_v56 = vadd.f32 %v692_v36, %v687_v53 }
 0x697   :  { %1319 = vtanh.f32 %v693_v56 }
 0x6a1   :  { %v1320_v57 = vpop.eup %1319 }
 0x6a2   :  { %1160 = vmatmul.mubr.msk.f32.vlgmr.msra.gmra.mrb[4].mxu0 %vm153_vm1, %v1320_v57 }
 0x6a3   :  { %1222 = vmatpush3.bf16.msra.mxu0 %v1439_v14  ;;  %1181 = vmatprep.mubr.msk.f32.mxu0 %vm1358_vm0, %v1359_v16 }
 0x6a4   :  { %1223 = vmatprep.subr.bf16.mxu0 %v1357_v13  ;;  %v903_v13 = vrot.slane %v1455_v19, 6 }
 0x6a6   :  { %1236 = vpush %v903_v13 }
 0x6a7   :  { %1225 = vmatpush3.bf16.msra.mxu0 %v1450_v18 }
 0x6d7   :  { %s1237_s19 = spop %1236 }
 0x6d8   :  { %v905_v43 = vstv %s1237_s19 }
 0x775   :  { %v764_v32 = vpop.f32.mrb[4].mxu0 }
 0x776   :  { %v765_v25 = vadd.f32 %v1532_v21, %v764_v32  ;;  %v1161_v59 = vpop.f32.mrb[5].mxu0 }
 0x778   :  { %v772_v60 = vmul.f32 %v770_v58, %v765_v25 }
 0x77a   :  { %v773_v61 = vadd.f32 %v772_v60, %v638_v12 }
 0x77c   :  { %794 = vperm.xlu0 %1296, %v773_v61   ;;  %778 = vperm.xlu1 %1294, %v773_v61   ;;  %775 = vst.msk [vmem:[#allocation2 + $0xa] sm:$0x3] %vm59_vm2, %v773_v61 }
 0x780   :  { %1299 = vset.pattern.permute.xlu0 %v1355_v8  ;;  %1295 = vset.pattern.permute.xlu1 %v1349_v2 }
 0x781   :  { %812 = vperm.xlu0 %1299, %v773_v61   ;;  %788 = vperm.xlu1 %1295, %v773_v61  }
 0x785   :  { %1297 = vset.pattern.permute.xlu1 %v1352_v5  ;;  %1302 = vset.pattern.permute.xlu0 %v1350_v3  ;;  %v785_v3 = vrot.slane %v1482_v34, %v122_v51 }
 0x786   :  { %800 = vperm.xlu1 %1297, %v773_v61  }
 0x78a   :  { %1298 = vset.pattern.permute.xlu1 %v1353_v6 }
 0x78b   :  { %806 = vperm.xlu1 %1298, %v773_v61  }
 0x78f   :  { %1300 = vset.pattern.permute.xlu1 %v1354_v7 }
 0x790   :  { %818 = vperm.xlu1 %1300, %v773_v61  }
 0x794   :  { %1301 = vset.pattern.permute.xlu1 %v1356_v9 }
 0x795   :  { %824 = vperm.xlu1 %1301, %v773_v61  }
 0x799   :  { %1303 = vset.pattern.permute.xlu1 %v1349_v2 }
 0x7fb   :  { %v779_v14 = vpop.permute.xlu1 %778  ;;  %v795_v10 = vpop.permute.xlu0 %794 }
 0x7fc   :  { %v781_v16 = vmul.f32 %v779_v14, %v1475_v31  ;;  %v797_v12 = vmul.f32 %v795_v10, %v1489_v40 }
 0x7fe   :  { %v786_v62 = vadd.f32 %v785_v3, %v781_v16 }
 0x800   :  { %v789_v18 = vpop.permute.xlu1 %788  ;;  %v813_v26 = vpop.permute.xlu0 %812 }
 0x801   :  { %v791_v63 = vmul.f32 %v789_v18, %v1480_v33  ;;  %v815_v51 = vmul.f32 %v813_v26, %v1507_v54 }
 0x803   :  { %v792_v11 = vadd.f32 %v791_v63, %v786_v62 }
 0x805   :  { %v801_v15 = vpop.permute.xlu1 %800  ;;  %v798_v2 = vadd.f32 %v797_v12, %v792_v11 }
 0x806   :  { %v803_v17 = vmul.f32 %v801_v15, %v1493_v41 }
 0x808   :  { %v804_v23 = vadd.f32 %v803_v17, %v798_v2 }
 0x80a   :  { %v807_v20 = vpop.permute.xlu1 %806 }
 0x80b   :  { %v809_v24 = vmul.f32 %v807_v20, %v1500_v47 }
 0x80d   :  { %v810_v27 = vadd.f32 %v809_v24, %v804_v23 }
 0x80f   :  { %v819_v28 = vpop.permute.xlu1 %818  ;;  %v816_v29 = vadd.f32 %v815_v51, %v810_v27 }
 0x810   :  { %v821_v0 = vmul.f32 %v819_v28, %v1511_v55 }
 0x812   :  { %v822_v35 = vadd.f32 %v821_v0, %v816_v29 }
 0x814   :  { %v825_v30 = vpop.permute.xlu1 %824 }
 0x815   :  { %v827_v37 = vmul.f32 %v825_v30, %v1517_v1 }
 0x817   :  { %v828_v38 = vadd.f32 %v827_v37, %v822_v35 }
 0x819   :  { %1321 = vtanh.f32 %v828_v38 }
 0x823   :  { %v1322_v39 = vpop.eup %1321 }
 0x824   :  { %1171 = vmatmul.mubr.msk.f32.vlgmr.msra.gmra.mrb[4].mxu1 %vm153_vm1, %v1322_v39 }
 0x8f7   :  { %v899_v42 = vpop.f32.mrb[4].mxu1 }
 0x8f8   :  { %v900_v44 = vadd.f32 %v1532_v21, %v899_v42  ;;  %v1172_v45 = vpop.f32.mrb[5].mxu1 }
 0x8fa   :  { %v907_v46 = vmul.f32 %v905_v43, %v900_v44 }
 0x8fc   :  { %v908_v48 = vadd.f32 %v907_v46, %v773_v61 }
 0x8fe   :  { %923 = vperm.xlu1 %1303, %v908_v48   ;;  %913 = vperm.xlu0 %1302, %v908_v48   ;;  %910 = vst.msk [vmem:[#allocation2 + $0xc] sm:$0x3] %vm59_vm2, %v908_v48 }
 0x902   :  { %1304 = vset.pattern.permute.xlu1 %v1351_v4  ;;  %1305 = vset.pattern.permute.xlu0 %v1352_v5  ;;  %v1038_v4 = vrot.slane %v1455_v19, 7 }
 0x903   :  { %929 = vperm.xlu1 %1304, %v908_v48   ;;  %935 = vperm.xlu0 %1305, %v908_v48  }
 0x904   :  { %1238 = vpush %v1038_v4 }
 0x907   :  { %1306 = vset.pattern.permute.xlu1 %v1353_v6  ;;  %1308 = vset.pattern.permute.xlu0 %v1354_v7  ;;  %v920_v6 = vrot.slane %v1482_v34, %v132_v52 }
 0x908   :  { %941 = vperm.xlu1 %1306, %v908_v48   ;;  %953 = vperm.xlu0 %1308, %v908_v48  }
 0x90c   :  { %1307 = vset.pattern.permute.xlu1 %v1355_v8  ;;  %1310 = vset.pattern.permute.xlu0 %v1356_v9 }
 0x90d   :  { %947 = vperm.xlu1 %1307, %v908_v48  }
 0x911   :  { %1309 = vset.pattern.permute.xlu1 %v1356_v9 }
 0x912   :  { %959 = vperm.xlu1 %1309, %v908_v48  }
 0x935   :  { %s1239_s20 = spop %1238 }
 0x97d   :  { %v924_v5 = vpop.permute.xlu1 %923  ;;  %v914_v49 = vpop.permute.xlu0 %913 }
 0x97e   :  { %v916_v7 = vmul.f32 %v914_v49, %v1475_v31  ;;  %v926_v50 = vmul.f32 %v924_v5, %v1480_v33 }
 0x980   :  { %v921_v8 = vadd.f32 %v920_v6, %v916_v7 }
 0x982   :  { %v930_v36 = vpop.permute.xlu1 %929  ;;  %v927_v53 = vadd.f32 %v926_v50, %v921_v8  ;;  %v936_v9 = vpop.permute.xlu0 %935 }
 0x983   :  { %v932_v56 = vmul.f32 %v930_v36, %v1489_v40  ;;  %v938_v19 = vmul.f32 %v936_v9, %v1493_v41 }
 0x985   :  { %v933_v57 = vadd.f32 %v932_v56, %v927_v53 }
 0x987   :  { %v942_v32 = vpop.permute.xlu1 %941  ;;  %v939_v58 = vadd.f32 %v938_v19, %v933_v57  ;;  %v954_v22 = vpop.permute.xlu0 %953 }
 0x988   :  { %v944_v25 = vmul.f32 %v942_v32, %v1500_v47  ;;  %v956_v33 = vmul.f32 %v954_v22, %v1511_v55  ;;  %v1040_v47 = vstv %s1239_s20 }
 0x98a   :  { %v945_v34 = vadd.f32 %v944_v25, %v939_v58 }
 0x98c   :  { %v948_v59 = vpop.permute.xlu1 %947 }
 0x98d   :  { %v950_v31 = vmul.f32 %v948_v59, %v1507_v54 }
 0x98f   :  { %v951_v52 = vadd.f32 %v950_v31, %v945_v34 }
 0x991   :  { %v960_v60 = vpop.permute.xlu1 %959  ;;  %v957_v61 = vadd.f32 %v956_v33, %v951_v52 }
 0x992   :  { %v962_v40 = vmul.f32 %v960_v60, %v1517_v1 }
 0x994   :  { %v963_v13 = vadd.f32 %v962_v40, %v957_v61 }
 0x996   :  { %1323 = vtanh.f32 %v963_v13 }
 0x9a0   :  { %v1324_v14 = vpop.eup %1323 }
 0x9a1   :  { %1182 = vmatmul.mubr.msk.f32.vlgmr.msra.gmra.mrb[6].mxu0 %vm153_vm1, %v1324_v14 }
 0xa74   :  { %v1034_v41 = vpop.f32.mrb[6].mxu0 }
 0xa75   :  { %v1035_v16 = vadd.f32 %v1532_v21, %v1034_v41  ;;  %v1183_v3 = vpop.f32.mrb[7].mxu0 }
 0xa77   :  { %v1042_v54 = vmul.f32 %v1040_v47, %v1035_v16 }
 0xa79   :  { %v1043_v55 = vadd.f32 %v1042_v54, %v908_v48 }
 0xa7b   :  { %1045 = vst.msk [vmem:[#allocation2 + $0xe] sm:$0x3] %vm59_vm2, %v1043_v55 }
 0xa7c   :  { %1336 = shalt.err (!%p1333_p4)
}
 0xa7d   :  { %s1337_s26 = scalar_lea.hbm %s1715_s7, 256 }
 0xa7e   :  { %p1338_p5 = scmp.ne.s32.totalorder %s1715_s7, %s1337_s26  ;;  %p1341_p6 = scmp.lt.u32.totalorder %s1337_s26, %s1715_s7 }
 0xa80   :  { %p1343_p7 = pnand %p1341_p6, %p1338_p5 }
 0xa82   :  { %1346 = shalt.err (!%p1343_p7)
}
 0xa83   :  { %s1361_s29 = smov 32   ;;  %s1362_s30 = smov 2  }
 0xa84   :  { %1057 = dma.vmem_to_hbm [thread:$0]  %s1052_s22, 256, %s1715_s7, [#allocation3], %s1361_s29, %s1361_s29, %s1362_s30  }
 0xa85   :  { %1347 = dma.done.wait [#allocation3], 256  }
 0xa86   :  { %1348 = vsyncadd [#allocation3], 4294967040 }
 0xa87   :  { %1061 = vsyncpa [#allocation3], 1 }

</bundles_post_ra>
